<compile_context>
chip_gen: v5e
topology: v5e:2x2
jax: 0.10.0
libtpu: 0.0.40
codegen_flags: <defaults>
</compile_context>

<pallas_src>
import math

import jax
import jax.numpy as jnp
import numpy as np
from jax import lax
from jax.experimental import pallas as pl
from jax.experimental.pallas import tpu as pltpu

SEQ = 8            # query length i
BATCH = 2          # b
D_MODEL = 32       # h
N_HEAD = 4         # n
D_HEAD = 8         # d
D_FF = 64          # dim_feedforward
P_LEN = SEQ + 1    # relative position embedding length (klen + 1, mem=None path)
SCALE = 1.0 / math.sqrt(D_HEAD)
LN_EPS = 1e-5
ND = N_HEAD * D_HEAD


def _layer_norm(x, w, b):
    mu = jnp.mean(x, axis=-1, keepdims=True)
    xc = x - mu
    var = jnp.mean(xc * xc, axis=-1, keepdims=True)
    return xc * lax.rsqrt(var + LN_EPS) * w + b


def _gelu_tanh(x):
    # tanh-approximation GELU (EUP tanh); within the test tolerance of exact erf-GELU.
    c = math.sqrt(2.0 / math.pi)
    return 0.5 * x * (1.0 + jnp.tanh(c * (x + 0.044715 * x * x * x)))


def _gelu_exact(x):
    # exact erf-based GELU (torch.nn.functional.gelu default) -- reference only.
    return 0.5 * x * (1.0 + lax.erf(x * (1.0 / math.sqrt(2.0))))


# ---------------------------------------------------------------------------
# Fused kernel: whole encoder layer for all batch elements in one grid step.
# ---------------------------------------------------------------------------
def _encoder_kernel(src_ref, pos_ref, wqkvr_ref, rw_ref, rr_ref, wo_ref,
                    w1_ref, b1_ref, w2_ref, b2_ref,
                    ln1w_ref, ln1b_ref, ln2w_ref, ln2b_ref, out_ref):
    f32 = jnp.float32
    I, P, H = SEQ, P_LEN, D_MODEL

    wqkvr = wqkvr_ref[...]                       # (H, 4*ND) = (32, 128)
    rw = rw_ref[...]                             # (1, ND)
    rr = rr_ref[...]                             # (1, ND)
    wo = wo_ref[...]                             # (ND, H)
    w1 = w1_ref[...]                             # (H, D_FF)
    b1 = b1_ref[...]                             # (1, D_FF)
    w2 = w2_ref[...]                             # (D_FF, H)
    b2 = b2_ref[...]                             # (1, H)
    ln1w = ln1w_ref[...]; ln1b = ln1b_ref[...]
    ln2w = ln2w_ref[...]; ln2b = ln2b_ref[...]

    # ---------- constants for the in-kernel _rel_shift (hoisted, built once) ----------
    # Row "shift up by one" permutation: ROT[a, b] = 1 iff b == a + 1  (last row -> 0).
    ra = lax.broadcasted_iota(jnp.int32, (I, I), 0)
    rb = lax.broadcasted_iota(jnp.int32, (I, I), 1)
    rot_up = (rb == ra + 1).astype(f32)                                   # (I, I)

    # Circular right-roll-by-k permutation over the P columns:
    #   (X @ C_k)[i, j] = X[i, (j - k) mod P]
    cin = lax.broadcasted_iota(jnp.int32, (P, P), 0)
    cout = lax.broadcasted_iota(jnp.int32, (P, P), 1)

    def _roll_mat(k):
        d = cin - cout + k                                                # in (-P, 2P)
        return jnp.logical_or(d == 0, d == P).astype(f32)

    roll_mats = [_roll_mat(1), _roll_mat(2), _roll_mat(4), _roll_mat(8)]

    # Row i must be rolled right by (i + 1); decompose the shift in binary.
    row1 = lax.broadcasted_iota(jnp.int32, (I, 1), 0) + 1                 # (I, 1) = i + 1
    bit_masks = [(row1 & (1 << k)) > 0 for k in range(4)]                 # bool (I, 1)

    # Pre-roll mixing mask: W[i, c] = nxt[i, c] if c + i <= I - 1 else bdf[i, c],
    # so that rolling row i of W right by (i + 1) reproduces the torch flat rel_shift.
    sel_col = lax.broadcasted_iota(jnp.int32, (I, P), 1)
    sel_row = lax.broadcasted_iota(jnp.int32, (I, P), 0)
    use_next = (sel_col + sel_row) <= (I - 1)                             # bool (I, P)

    cdims = (((1,), (1,)), ((), ()))                                      # contract feature dims

    for b in range(BATCH):                                                # static unroll over batch
        s_b = src_ref[:, b * H:(b + 1) * H]                               # (I, H)
        p_b = pos_ref[:, b * H:(b + 1) * H]                               # (P, H)

        # Merged lane-dense projection: one (rows, 32) @ (32, 128) pass per operand.
        proj_s = jnp.dot(s_b, wqkvr, preferred_element_type=f32)          # (I, 4*ND)
        proj_p = jnp.dot(p_b, wqkvr, preferred_element_type=f32)          # (P, 4*ND)
        q = proj_s[:, 0:ND]
        k = proj_s[:, ND:2 * ND]
        v = proj_s[:, 2 * ND:3 * ND]
        r = proj_p[:, 3 * ND:4 * ND]                                      # (P, ND)

        qw = q + rw                                                       # + r_w_bias
        qr = q + rr                                                       # + r_r_bias
        qrs = jnp.dot(rot_up, qr, preferred_element_type=f32)             # qr rows shifted up by 1

        attn_out = jnp.zeros((I, H), f32)
        for n in range(N_HEAD):                                           # static unroll over heads
            sl = slice(n * D_HEAD, (n + 1) * D_HEAD)
            qw_h = qw[:, sl]
            qr_h = qr[:, sl]
            qrs_h = qrs[:, sl]
            k_h = k[:, sl]
            v_h = v[:, sl]
            r_h = r[:, sl]

            ac = lax.dot_general(qw_h, k_h, cdims, preferred_element_type=f32)    # (I, I)
            bdf = lax.dot_general(qr_h, r_h, cdims, preferred_element_type=f32)   # (I, P)
            nxt = lax.dot_general(qrs_h, r_h, cdims, preferred_element_type=f32)  # bdf rows shifted up

            # ---- _rel_shift, fully in VMEM/vregs ----
            w_mix = jnp.where(use_next, nxt, bdf)                         # (I, P)
            for kk in range(4):                                           # barrel-shift each row by i+1
                rolled = jnp.dot(w_mix, roll_mats[kk], preferred_element_type=f32)
                w_mix = jnp.where(bit_masks[kk], rolled, w_mix)
            bd = w_mix[:, :I]                                             # (I, I), klen = I

            score = (ac + bd) * SCALE                                     # attn_mask is None
            m = jnp.max(score, axis=-1, keepdims=True)
            e = jnp.exp(score - m)
            denom = jnp.sum(e, axis=-1, keepdims=True)
            prob = e * pl.reciprocal(denom, approx=True)                  # softmax over key dim

            head = jnp.dot(prob, v_h, preferred_element_type=f32)         # (I, D_HEAD)
            attn_out = attn_out + jnp.dot(head, wo[sl, :], preferred_element_type=f32)

        x = _layer_norm(s_b + attn_out, ln1w, ln1b)                       # norm1
        h = _gelu_tanh(jnp.dot(x, w1, preferred_element_type=f32) + b1)
        y = jnp.dot(h, w2, preferred_element_type=f32) + b2
        out_ref[:, b * H:(b + 1) * H] = _layer_norm(x + y, ln2w, ln2b)    # norm2


# ---------------------------------------------------------------------------
# Wrapper
# ---------------------------------------------------------------------------
def transformer_encoder_layer(src, pos_emb, params):
    """src: (SEQ, BATCH, D_MODEL); pos_emb: (P_LEN, BATCH, D_MODEL). mem/src_mask = None."""
    I, B, H = src.shape
    P = pos_emb.shape[0]

    # Free reshapes (merge trailing contiguous dims) -- no transpose / HBM copy.
    src2 = src.reshape(I, B * H)
    pos2 = pos_emb.reshape(P, B * H)

    # One lane-dense (32, 128) projection weight for q/k/v/r.
    wqkvr = jnp.concatenate(
        [params["wq"].reshape(H, ND), params["wk"].reshape(H, ND),
         params["wv"].reshape(H, ND), params["wr"].reshape(H, ND)], axis=1)
    wo = jnp.transpose(params["wo"], (1, 2, 0)).reshape(ND, H)   # (nd, h) for flat out-proj
    rw = params["r_w_bias"].reshape(1, ND)
    rr = params["r_r_bias"].reshape(1, ND)

    operands = [src2, pos2, wqkvr, rw, rr, wo,
                params["w1"], params["b1"], params["w2"], params["b2"],
                params["ln1_w"], params["ln1_b"], params["ln2_w"], params["ln2_b"]]

    vmem_spec = pl.BlockSpec(memory_space=pltpu.MemorySpace.VMEM)
    out2 = pl.pallas_call(
        _encoder_kernel,
        out_shape=jax.ShapeDtypeStruct((I, B * H), jnp.float32),
        in_specs=[vmem_spec] * len(operands),
        out_specs=vmem_spec,
    )(*operands)

    return out2.reshape(I, B, H)                                  # free reshape back


# ---------------------------------------------------------------------------
# Pure-JAX reference (mirrors the PyTorch forward, eval-mode dropouts)
# ---------------------------------------------------------------------------
def reference_forward(src, pos_emb, params):
    q_head = jnp.einsum("ibh,hnd->ibnd", src, params["wq"])
    k_head = jnp.einsum("ibh,hnd->ibnd", src, params["wk"])
    v_head = jnp.einsum("ibh,hnd->ibnd", src, params["wv"])
    r_head = jnp.einsum("ibh,hnd->ibnd", pos_emb, params["wr"])
    ac = jnp.einsum("ibnd,jbnd->ijbn", q_head + params["r_w_bias"], k_head)
    bd = jnp.einsum("ibnd,jbnd->ijbn", q_head + params["r_r_bias"], r_head)
    I, P, B, N = bd.shape
    bd = bd.reshape(P, I, B, N)[1:].reshape(I, P - 1, B, N)[:, :ac.shape[1]]  # _rel_shift
    score = (ac + bd) * SCALE
    prob = jax.nn.softmax(score, axis=1)
    attn_vec = jnp.einsum("ijbn,jbnd->ibnd", prob, v_head)
    attn_out = jnp.einsum("ibnd,hnd->ibh", attn_vec, params["wo"])
    x = _layer_norm(src + attn_out, params["ln1_w"][0], params["ln1_b"][0])
    ff = _gelu_exact(x @ params["w1"] + params["b1"][0]) @ params["w2"] + params["b2"][0]
    return _layer_norm(x + ff, params["ln2_w"][0], params["ln2_b"][0])


if __name__ == "__main__":
    key = jax.random.PRNGKey(0)
    ks = jax.random.split(key, 16)
    f32 = jnp.float32

    params = dict(
        wq=0.05 * jax.random.normal(ks[0], (D_MODEL, N_HEAD, D_HEAD), f32),
        wk=0.05 * jax.random.normal(ks[1], (D_MODEL, N_HEAD, D_HEAD), f32),
        wv=0.05 * jax.random.normal(ks[2], (D_MODEL, N_HEAD, D_HEAD), f32),
        wr=0.05 * jax.random.normal(ks[3], (D_MODEL, N_HEAD, D_HEAD), f32),
        wo=0.05 * jax.random.normal(ks[4], (D_MODEL, N_HEAD, D_HEAD), f32),
        r_w_bias=0.05 * jax.random.normal(ks[5], (N_HEAD, D_HEAD), f32),
        r_r_bias=0.05 * jax.random.normal(ks[6], (N_HEAD, D_HEAD), f32),
        # nn.Linear-style init (weights stored already transposed: (in, out))
        w1=jax.random.uniform(ks[7], (D_MODEL, D_FF), f32, -1.0, 1.0) / math.sqrt(D_MODEL),
        b1=jax.random.uniform(ks[8], (1, D_FF), f32, -1.0, 1.0) / math.sqrt(D_MODEL),
        w2=jax.random.uniform(ks[9], (D_FF, D_MODEL), f32, -1.0, 1.0) / math.sqrt(D_FF),
        b2=jax.random.uniform(ks[10], (1, D_MODEL), f32, -1.0, 1.0) / math.sqrt(D_FF),
        ln1_w=jnp.ones((1, D_MODEL), f32), ln1_b=jnp.zeros((1, D_MODEL), f32),
        ln2_w=jnp.ones((1, D_MODEL), f32), ln2_b=jnp.zeros((1, D_MODEL), f32),
    )

    src = jax.random.normal(ks[11], (SEQ, BATCH, D_MODEL), f32)
    pos_emb = jax.random.normal(ks[12], (P_LEN, BATCH, D_MODEL), f32)

    fn = jax.jit(transformer_encoder_layer)
    out = fn(src, pos_emb, params)
    out = jax.block_until_ready(out)

    ref = reference_forward(src, pos_emb, params)
    assert out.shape == (SEQ, BATCH, D_MODEL)
    np.testing.assert_allclose(np.asarray(out), np.asarray(ref), rtol=5e-3, atol=5e-3)
    print("KERNEL_OK")
</pallas_src>

<mosaic_0001>
module attributes {stable_mosaic.version = 11 : i64} {
  func.func @_encoder_kernel(%arg0: memref<8x64xf32, #tpu.memory_space<vmem>>, %arg1: memref<9x64xf32, #tpu.memory_space<vmem>>, %arg2: memref<32x128xf32, #tpu.memory_space<vmem>>, %arg3: memref<1x32xf32, #tpu.memory_space<vmem>>, %arg4: memref<1x32xf32, #tpu.memory_space<vmem>>, %arg5: memref<32x32xf32, #tpu.memory_space<vmem>>, %arg6: memref<32x64xf32, #tpu.memory_space<vmem>>, %arg7: memref<1x64xf32, #tpu.memory_space<vmem>>, %arg8: memref<64x32xf32, #tpu.memory_space<vmem>>, %arg9: memref<1x32xf32, #tpu.memory_space<vmem>>, %arg10: memref<1x32xf32, #tpu.memory_space<vmem>>, %arg11: memref<1x32xf32, #tpu.memory_space<vmem>>, %arg12: memref<1x32xf32, #tpu.memory_space<vmem>>, %arg13: memref<1x32xf32, #tpu.memory_space<vmem>>, %arg14: memref<8x64xf32, #tpu.memory_space<vmem>>) attributes {dimension_semantics = [], scalar_prefetch = 0 : i64, scratch_operands = 0 : i64, tpu.core_type = #tpu.core_type<tc>} {
    %c0 = arith.constant 0 : index
    %c0_0 = arith.constant 0 : index
    %0 = vector.load %arg2[%c0, %c0_0] : memref<32x128xf32, #tpu.memory_space<vmem>>, vector<32x128xf32>
    %c0_1 = arith.constant 0 : index
    %c0_2 = arith.constant 0 : index
    %1 = vector.load %arg3[%c0_1, %c0_2] : memref<1x32xf32, #tpu.memory_space<vmem>>, vector<1x32xf32>
    %c0_3 = arith.constant 0 : index
    %c0_4 = arith.constant 0 : index
    %2 = vector.load %arg4[%c0_3, %c0_4] : memref<1x32xf32, #tpu.memory_space<vmem>>, vector<1x32xf32>
    %c0_5 = arith.constant 0 : index
    %c0_6 = arith.constant 0 : index
    %3 = vector.load %arg5[%c0_5, %c0_6] : memref<32x32xf32, #tpu.memory_space<vmem>>, vector<32x32xf32>
    %c0_7 = arith.constant 0 : index
    %c0_8 = arith.constant 0 : index
    %4 = vector.load %arg6[%c0_7, %c0_8] : memref<32x64xf32, #tpu.memory_space<vmem>>, vector<32x64xf32>
    %c0_9 = arith.constant 0 : index
    %c0_10 = arith.constant 0 : index
    %5 = vector.load %arg7[%c0_9, %c0_10] : memref<1x64xf32, #tpu.memory_space<vmem>>, vector<1x64xf32>
    %c0_11 = arith.constant 0 : index
    %c0_12 = arith.constant 0 : index
    %6 = vector.load %arg8[%c0_11, %c0_12] : memref<64x32xf32, #tpu.memory_space<vmem>>, vector<64x32xf32>
    %c0_13 = arith.constant 0 : index
    %c0_14 = arith.constant 0 : index
    %7 = vector.load %arg9[%c0_13, %c0_14] : memref<1x32xf32, #tpu.memory_space<vmem>>, vector<1x32xf32>
    %c0_15 = arith.constant 0 : index
    %c0_16 = arith.constant 0 : index
    %8 = vector.load %arg10[%c0_15, %c0_16] : memref<1x32xf32, #tpu.memory_space<vmem>>, vector<1x32xf32>
    %c0_17 = arith.constant 0 : index
    %c0_18 = arith.constant 0 : index
    %9 = vector.load %arg11[%c0_17, %c0_18] : memref<1x32xf32, #tpu.memory_space<vmem>>, vector<1x32xf32>
    %c0_19 = arith.constant 0 : index
    %c0_20 = arith.constant 0 : index
    %10 = vector.load %arg12[%c0_19, %c0_20] : memref<1x32xf32, #tpu.memory_space<vmem>>, vector<1x32xf32>
    %c0_21 = arith.constant 0 : index
    %c0_22 = arith.constant 0 : index
    %11 = vector.load %arg13[%c0_21, %c0_22] : memref<1x32xf32, #tpu.memory_space<vmem>>, vector<1x32xf32>
    %12 = tpu.iota {dimensions = array<i32: 0>} : vector<8x8xi32>
    %13 = tpu.iota {dimensions = array<i32: 1>} : vector<8x8xi32>
    %c1_i32 = arith.constant 1 : i32
    %14 = vector.broadcast %c1_i32 : i32 to vector<8x8xi32>
    %15 = arith.addi %12, %14 : vector<8x8xi32>
    %16 = arith.cmpi eq, %13, %15 : vector<8x8xi32>
    %17 = arith.extui %16 : vector<8x8xi1> to vector<8x8xi32>
    %18 = arith.sitofp %17 : vector<8x8xi32> to vector<8x8xf32>
    %19 = tpu.iota {dimensions = array<i32: 0>} : vector<9x9xi32>
    %20 = tpu.iota {dimensions = array<i32: 1>} : vector<9x9xi32>
    %21 = arith.subi %19, %20 : vector<9x9xi32>
    %c1_i32_23 = arith.constant 1 : i32
    %22 = vector.broadcast %c1_i32_23 : i32 to vector<9x9xi32>
    %23 = arith.addi %21, %22 : vector<9x9xi32>
    %c0_i32 = arith.constant 0 : i32
    %24 = vector.broadcast %c0_i32 : i32 to vector<9x9xi32>
    %25 = arith.cmpi eq, %23, %24 : vector<9x9xi32>
    %c9_i32 = arith.constant 9 : i32
    %26 = vector.broadcast %c9_i32 : i32 to vector<9x9xi32>
    %27 = arith.cmpi eq, %23, %26 : vector<9x9xi32>
    %28 = arith.ori %25, %27 : vector<9x9xi1>
    %29 = arith.extui %28 : vector<9x9xi1> to vector<9x9xi32>
    %30 = arith.sitofp %29 : vector<9x9xi32> to vector<9x9xf32>
    %31 = arith.subi %19, %20 : vector<9x9xi32>
    %c2_i32 = arith.constant 2 : i32
    %32 = vector.broadcast %c2_i32 : i32 to vector<9x9xi32>
    %33 = arith.addi %31, %32 : vector<9x9xi32>
    %c0_i32_24 = arith.constant 0 : i32
    %34 = vector.broadcast %c0_i32_24 : i32 to vector<9x9xi32>
    %35 = arith.cmpi eq, %33, %34 : vector<9x9xi32>
    %c9_i32_25 = arith.constant 9 : i32
    %36 = vector.broadcast %c9_i32_25 : i32 to vector<9x9xi32>
    %37 = arith.cmpi eq, %33, %36 : vector<9x9xi32>
    %38 = arith.ori %35, %37 : vector<9x9xi1>
    %39 = arith.extui %38 : vector<9x9xi1> to vector<9x9xi32>
    %40 = arith.sitofp %39 : vector<9x9xi32> to vector<9x9xf32>
    %41 = arith.subi %19, %20 : vector<9x9xi32>
    %c4_i32 = arith.constant 4 : i32
    %42 = vector.broadcast %c4_i32 : i32 to vector<9x9xi32>
    %43 = arith.addi %41, %42 : vector<9x9xi32>
    %c0_i32_26 = arith.constant 0 : i32
    %44 = vector.broadcast %c0_i32_26 : i32 to vector<9x9xi32>
    %45 = arith.cmpi eq, %43, %44 : vector<9x9xi32>
    %c9_i32_27 = arith.constant 9 : i32
    %46 = vector.broadcast %c9_i32_27 : i32 to vector<9x9xi32>
    %47 = arith.cmpi eq, %43, %46 : vector<9x9xi32>
    %48 = arith.ori %45, %47 : vector<9x9xi1>
    %49 = arith.extui %48 : vector<9x9xi1> to vector<9x9xi32>
    %50 = arith.sitofp %49 : vector<9x9xi32> to vector<9x9xf32>
    %51 = arith.subi %19, %20 : vector<9x9xi32>
    %c8_i32 = arith.constant 8 : i32
    %52 = vector.broadcast %c8_i32 : i32 to vector<9x9xi32>
    %53 = arith.addi %51, %52 : vector<9x9xi32>
    %c0_i32_28 = arith.constant 0 : i32
    %54 = vector.broadcast %c0_i32_28 : i32 to vector<9x9xi32>
    %55 = arith.cmpi eq, %53, %54 : vector<9x9xi32>
    %c9_i32_29 = arith.constant 9 : i32
    %56 = vector.broadcast %c9_i32_29 : i32 to vector<9x9xi32>
    %57 = arith.cmpi eq, %53, %56 : vector<9x9xi32>
    %58 = arith.ori %55, %57 : vector<9x9xi1>
    %59 = arith.extui %58 : vector<9x9xi1> to vector<9x9xi32>
    %60 = arith.sitofp %59 : vector<9x9xi32> to vector<9x9xf32>
    %61 = tpu.iota {dimensions = array<i32: 0>} : vector<8x1xi32>
    %c1_i32_30 = arith.constant 1 : i32
    %62 = vector.broadcast %c1_i32_30 : i32 to vector<8x1xi32>
    %63 = arith.addi %61, %62 : vector<8x1xi32>
    %c1_i32_31 = arith.constant 1 : i32
    %64 = vector.broadcast %c1_i32_31 : i32 to vector<8x1xi32>
    %65 = arith.andi %63, %64 : vector<8x1xi32>
    %c0_i32_32 = arith.constant 0 : i32
    %66 = vector.broadcast %c0_i32_32 : i32 to vector<8x1xi32>
    %67 = arith.cmpi sgt, %65, %66 : vector<8x1xi32>
    %c2_i32_33 = arith.constant 2 : i32
    %68 = vector.broadcast %c2_i32_33 : i32 to vector<8x1xi32>
    %69 = arith.andi %63, %68 : vector<8x1xi32>
    %c0_i32_34 = arith.constant 0 : i32
    %70 = vector.broadcast %c0_i32_34 : i32 to vector<8x1xi32>
    %71 = arith.cmpi sgt, %69, %70 : vector<8x1xi32>
    %c4_i32_35 = arith.constant 4 : i32
    %72 = vector.broadcast %c4_i32_35 : i32 to vector<8x1xi32>
    %73 = arith.andi %63, %72 : vector<8x1xi32>
    %c0_i32_36 = arith.constant 0 : i32
    %74 = vector.broadcast %c0_i32_36 : i32 to vector<8x1xi32>
    %75 = arith.cmpi sgt, %73, %74 : vector<8x1xi32>
    %c8_i32_37 = arith.constant 8 : i32
    %76 = vector.broadcast %c8_i32_37 : i32 to vector<8x1xi32>
    %77 = arith.andi %63, %76 : vector<8x1xi32>
    %c0_i32_38 = arith.constant 0 : i32
    %78 = vector.broadcast %c0_i32_38 : i32 to vector<8x1xi32>
    %79 = arith.cmpi sgt, %77, %78 : vector<8x1xi32>
    %80 = tpu.iota {dimensions = array<i32: 1>} : vector<8x9xi32>
    %81 = tpu.iota {dimensions = array<i32: 0>} : vector<8x9xi32>
    %82 = arith.addi %80, %81 : vector<8x9xi32>
    %c7_i32 = arith.constant 7 : i32
    %83 = vector.broadcast %c7_i32 : i32 to vector<8x9xi32>
    %84 = arith.cmpi sle, %82, %83 : vector<8x9xi32>
    %c0_39 = arith.constant 0 : index
    %c0_40 = arith.constant 0 : index
    %85 = vector.load %arg0[%c0_39, %c0_40] : memref<8x64xf32, #tpu.memory_space<vmem>>, vector<8x32xf32>
    %c0_41 = arith.constant 0 : index
    %c0_42 = arith.constant 0 : index
    %86 = vector.load %arg1[%c0_41, %c0_42] : memref<9x64xf32, #tpu.memory_space<vmem>>, vector<9x32xf32>
    %cst = arith.constant dense<0.000000e+00> : vector<8x128xf32>
    %87 = tpu.matmul %85, %0, %cst {dimension_numbers = #tpu.dot_dimension_numbers<[1], [0], [0], [1], [0, 0, 1, 1], [], []>} : vector<8x32xf32>, vector<32x128xf32>, vector<8x128xf32> -> vector<8x128xf32>
    %cst_43 = arith.constant dense<0.000000e+00> : vector<9x128xf32>
    %88 = tpu.matmul %86, %0, %cst_43 {dimension_numbers = #tpu.dot_dimension_numbers<[1], [0], [0], [1], [0, 0, 1, 1], [], []>} : vector<9x32xf32>, vector<32x128xf32>, vector<9x128xf32> -> vector<9x128xf32>
    %89 = vector.extract_strided_slice %87 {offsets = [0, 0], sizes = [8, 32], strides = [1, 1]} : vector<8x128xf32> to vector<8x32xf32>
    %90 = vector.extract_strided_slice %87 {offsets = [0, 32], sizes = [8, 32], strides = [1, 1]} : vector<8x128xf32> to vector<8x32xf32>
    %91 = vector.extract_strided_slice %87 {offsets = [0, 64], sizes = [8, 32], strides = [1, 1]} : vector<8x128xf32> to vector<8x32xf32>
    %92 = vector.extract_strided_slice %88 {offsets = [0, 96], sizes = [9, 32], strides = [1, 1]} : vector<9x128xf32> to vector<9x32xf32>
    %93 = vector.broadcast %1 : vector<1x32xf32> to vector<8x32xf32>
    %94 = arith.addf %89, %93 : vector<8x32xf32>
    %95 = vector.broadcast %2 : vector<1x32xf32> to vector<8x32xf32>
    %96 = arith.addf %89, %95 : vector<8x32xf32>
    %cst_44 = arith.constant dense<0.000000e+00> : vector<8x32xf32>
    %97 = tpu.matmul %18, %96, %cst_44 {dimension_numbers = #tpu.dot_dimension_numbers<[1], [0], [0], [1], [0, 0, 1, 1], [], []>} : vector<8x8xf32>, vector<8x32xf32>, vector<8x32xf32> -> vector<8x32xf32>
    %cst_45 = arith.constant 0.000000e+00 : f32
    %98 = vector.broadcast %cst_45 : f32 to vector<8x32xf32>
    %99 = vector.extract_strided_slice %94 {offsets = [0, 0], sizes = [8, 8], strides = [1, 1]} : vector<8x32xf32> to vector<8x8xf32>
    %100 = vector.extract_strided_slice %96 {offsets = [0, 0], sizes = [8, 8], strides = [1, 1]} : vector<8x32xf32> to vector<8x8xf32>
    %101 = vector.extract_strided_slice %97 {offsets = [0, 0], sizes = [8, 8], strides = [1, 1]} : vector<8x32xf32> to vector<8x8xf32>
    %102 = vector.extract_strided_slice %90 {offsets = [0, 0], sizes = [8, 8], strides = [1, 1]} : vector<8x32xf32> to vector<8x8xf32>
    %103 = vector.extract_strided_slice %91 {offsets = [0, 0], sizes = [8, 8], strides = [1, 1]} : vector<8x32xf32> to vector<8x8xf32>
    %104 = vector.extract_strided_slice %92 {offsets = [0, 0], sizes = [9, 8], strides = [1, 1]} : vector<9x32xf32> to vector<9x8xf32>
    %cst_46 = arith.constant dense<0.000000e+00> : vector<8x8xf32>
    %105 = tpu.matmul %99, %102, %cst_46 {dimension_numbers = #tpu.dot_dimension_numbers<[1], [1], [0], [0], [0, 0, 1, 0], [], []>} : vector<8x8xf32>, vector<8x8xf32>, vector<8x8xf32> -> vector<8x8xf32>
    %cst_47 = arith.constant dense<0.000000e+00> : vector<8x9xf32>
    %106 = tpu.matmul %100, %104, %cst_47 {dimension_numbers = #tpu.dot_dimension_numbers<[1], [1], [0], [0], [0, 0, 1, 0], [], []>} : vector<8x8xf32>, vector<9x8xf32>, vector<8x9xf32> -> vector<8x9xf32>
    %cst_48 = arith.constant dense<0.000000e+00> : vector<8x9xf32>
    %107 = tpu.matmul %101, %104, %cst_48 {dimension_numbers = #tpu.dot_dimension_numbers<[1], [1], [0], [0], [0, 0, 1, 0], [], []>} : vector<8x8xf32>, vector<9x8xf32>, vector<8x9xf32> -> vector<8x9xf32>
    %108 = arith.select %84, %107, %106 : vector<8x9xi1>, vector<8x9xf32>
    %cst_49 = arith.constant dense<0.000000e+00> : vector<8x9xf32>
    %109 = tpu.matmul %108, %30, %cst_49 {dimension_numbers = #tpu.dot_dimension_numbers<[1], [0], [0], [1], [0, 0, 1, 1], [], []>} : vector<8x9xf32>, vector<9x9xf32>, vector<8x9xf32> -> vector<8x9xf32>
    %110 = vector.shape_cast %67 : vector<8x1xi1> to vector<8x1xi1>
    %111 = vector.broadcast %110 : vector<8x1xi1> to vector<8x9xi1>
    %112 = arith.select %111, %109, %108 : vector<8x9xi1>, vector<8x9xf32>
    %cst_50 = arith.constant dense<0.000000e+00> : vector<8x9xf32>
    %113 = tpu.matmul %112, %40, %cst_50 {dimension_numbers = #tpu.dot_dimension_numbers<[1], [0], [0], [1], [0, 0, 1, 1], [], []>} : vector<8x9xf32>, vector<9x9xf32>, vector<8x9xf32> -> vector<8x9xf32>
    %114 = vector.shape_cast %71 : vector<8x1xi1> to vector<8x1xi1>
    %115 = vector.broadcast %114 : vector<8x1xi1> to vector<8x9xi1>
    %116 = arith.select %115, %113, %112 : vector<8x9xi1>, vector<8x9xf32>
    %cst_51 = arith.constant dense<0.000000e+00> : vector<8x9xf32>
    %117 = tpu.matmul %116, %50, %cst_51 {dimension_numbers = #tpu.dot_dimension_numbers<[1], [0], [0], [1], [0, 0, 1, 1], [], []>} : vector<8x9xf32>, vector<9x9xf32>, vector<8x9xf32> -> vector<8x9xf32>
    %118 = vector.shape_cast %75 : vector<8x1xi1> to vector<8x1xi1>
    %119 = vector.broadcast %118 : vector<8x1xi1> to vector<8x9xi1>
    %120 = arith.select %119, %117, %116 : vector<8x9xi1>, vector<8x9xf32>
    %cst_52 = arith.constant dense<0.000000e+00> : vector<8x9xf32>
    %121 = tpu.matmul %120, %60, %cst_52 {dimension_numbers = #tpu.dot_dimension_numbers<[1], [0], [0], [1], [0, 0, 1, 1], [], []>} : vector<8x9xf32>, vector<9x9xf32>, vector<8x9xf32> -> vector<8x9xf32>
    %122 = vector.shape_cast %79 : vector<8x1xi1> to vector<8x1xi1>
    %123 = vector.broadcast %122 : vector<8x1xi1> to vector<8x9xi1>
    %124 = arith.select %123, %121, %120 : vector<8x9xi1>, vector<8x9xf32>
    %125 = vector.extract_strided_slice %124 {offsets = [0, 0], sizes = [8, 8], strides = [1, 1]} : vector<8x9xf32> to vector<8x8xf32>
    %126 = arith.addf %105, %125 : vector<8x8xf32>
    %cst_53 = arith.constant 0.353553385 : f32
    %127 = vector.broadcast %cst_53 : f32 to vector<8x8xf32>
    %128 = arith.mulf %126, %127 : vector<8x8xf32>
    %cst_54 = arith.constant dense<0xFF800000> : vector<8xf32>
    %129 = vector.multi_reduction <maximumf>, %128, %cst_54 [1] : vector<8x8xf32> to vector<8xf32>
    %130 = vector.shape_cast %129 : vector<8xf32> to vector<8x1xf32>
    %131 = vector.broadcast %130 : vector<8x1xf32> to vector<8x8xf32>
    %132 = arith.subf %128, %131 : vector<8x8xf32>
    %133 = math.exp %132 : vector<8x8xf32>
    %cst_55 = arith.constant dense<0.000000e+00> : vector<8xf32>
    %134 = vector.multi_reduction <add>, %133, %cst_55 [1] : vector<8x8xf32> to vector<8xf32>
    %135 = vector.shape_cast %134 : vector<8xf32> to vector<8x1xf32>
    %136 = tpu.reciprocal %135 {approx = true} : vector<8x1xf32> -> vector<8x1xf32>
    %137 = vector.broadcast %136 : vector<8x1xf32> to vector<8x8xf32>
    %138 = arith.mulf %133, %137 : vector<8x8xf32>
    %cst_56 = arith.constant dense<0.000000e+00> : vector<8x8xf32>
    %139 = tpu.matmul %138, %103, %cst_56 {dimension_numbers = #tpu.dot_dimension_numbers<[1], [0], [0], [1], [0, 0, 1, 1], [], []>} : vector<8x8xf32>, vector<8x8xf32>, vector<8x8xf32> -> vector<8x8xf32>
    %140 = vector.extract_strided_slice %3 {offsets = [0, 0], sizes = [8, 32], strides = [1, 1]} : vector<32x32xf32> to vector<8x32xf32>
    %cst_57 = arith.constant dense<0.000000e+00> : vector<8x32xf32>
    %141 = tpu.matmul %139, %140, %cst_57 {dimension_numbers = #tpu.dot_dimension_numbers<[1], [0], [0], [1], [0, 0, 1, 1], [], []>} : vector<8x8xf32>, vector<8x32xf32>, vector<8x32xf32> -> vector<8x32xf32>
    %142 = arith.addf %98, %141 : vector<8x32xf32>
    %143 = vector.extract_strided_slice %94 {offsets = [0, 8], sizes = [8, 8], strides = [1, 1]} : vector<8x32xf32> to vector<8x8xf32>
    %144 = vector.extract_strided_slice %96 {offsets = [0, 8], sizes = [8, 8], strides = [1, 1]} : vector<8x32xf32> to vector<8x8xf32>
    %145 = vector.extract_strided_slice %97 {offsets = [0, 8], sizes = [8, 8], strides = [1, 1]} : vector<8x32xf32> to vector<8x8xf32>
    %146 = vector.extract_strided_slice %90 {offsets = [0, 8], sizes = [8, 8], strides = [1, 1]} : vector<8x32xf32> to vector<8x8xf32>
    %147 = vector.extract_strided_slice %91 {offsets = [0, 8], sizes = [8, 8], strides = [1, 1]} : vector<8x32xf32> to vector<8x8xf32>
    %148 = vector.extract_strided_slice %92 {offsets = [0, 8], sizes = [9, 8], strides = [1, 1]} : vector<9x32xf32> to vector<9x8xf32>
    %cst_58 = arith.constant dense<0.000000e+00> : vector<8x8xf32>
    %149 = tpu.matmul %143, %146, %cst_58 {dimension_numbers = #tpu.dot_dimension_numbers<[1], [1], [0], [0], [0, 0, 1, 0], [], []>} : vector<8x8xf32>, vector<8x8xf32>, vector<8x8xf32> -> vector<8x8xf32>
    %cst_59 = arith.constant dense<0.000000e+00> : vector<8x9xf32>
    %150 = tpu.matmul %144, %148, %cst_59 {dimension_numbers = #tpu.dot_dimension_numbers<[1], [1], [0], [0], [0, 0, 1, 0], [], []>} : vector<8x8xf32>, vector<9x8xf32>, vector<8x9xf32> -> vector<8x9xf32>
    %cst_60 = arith.constant dense<0.000000e+00> : vector<8x9xf32>
    %151 = tpu.matmul %145, %148, %cst_60 {dimension_numbers = #tpu.dot_dimension_numbers<[1], [1], [0], [0], [0, 0, 1, 0], [], []>} : vector<8x8xf32>, vector<9x8xf32>, vector<8x9xf32> -> vector<8x9xf32>
    %152 = arith.select %84, %151, %150 : vector<8x9xi1>, vector<8x9xf32>
    %cst_61 = arith.constant dense<0.000000e+00> : vector<8x9xf32>
    %153 = tpu.matmul %152, %30, %cst_61 {dimension_numbers = #tpu.dot_dimension_numbers<[1], [0], [0], [1], [0, 0, 1, 1], [], []>} : vector<8x9xf32>, vector<9x9xf32>, vector<8x9xf32> -> vector<8x9xf32>
    %154 = vector.shape_cast %67 : vector<8x1xi1> to vector<8x1xi1>
    %155 = vector.broadcast %154 : vector<8x1xi1> to vector<8x9xi1>
    %156 = arith.select %155, %153, %152 : vector<8x9xi1>, vector<8x9xf32>
    %cst_62 = arith.constant dense<0.000000e+00> : vector<8x9xf32>
    %157 = tpu.matmul %156, %40, %cst_62 {dimension_numbers = #tpu.dot_dimension_numbers<[1], [0], [0], [1], [0, 0, 1, 1], [], []>} : vector<8x9xf32>, vector<9x9xf32>, vector<8x9xf32> -> vector<8x9xf32>
    %158 = vector.shape_cast %71 : vector<8x1xi1> to vector<8x1xi1>
    %159 = vector.broadcast %158 : vector<8x1xi1> to vector<8x9xi1>
    %160 = arith.select %159, %157, %156 : vector<8x9xi1>, vector<8x9xf32>
    %cst_63 = arith.constant dense<0.000000e+00> : vector<8x9xf32>
    %161 = tpu.matmul %160, %50, %cst_63 {dimension_numbers = #tpu.dot_dimension_numbers<[1], [0], [0], [1], [0, 0, 1, 1], [], []>} : vector<8x9xf32>, vector<9x9xf32>, vector<8x9xf32> -> vector<8x9xf32>
    %162 = vector.shape_cast %75 : vector<8x1xi1> to vector<8x1xi1>
    %163 = vector.broadcast %162 : vector<8x1xi1> to vector<8x9xi1>
    %164 = arith.select %163, %161, %160 : vector<8x9xi1>, vector<8x9xf32>
    %cst_64 = arith.constant dense<0.000000e+00> : vector<8x9xf32>
    %165 = tpu.matmul %164, %60, %cst_64 {dimension_numbers = #tpu.dot_dimension_numbers<[1], [0], [0], [1], [0, 0, 1, 1], [], []>} : vector<8x9xf32>, vector<9x9xf32>, vector<8x9xf32> -> vector<8x9xf32>
    %166 = vector.shape_cast %79 : vector<8x1xi1> to vector<8x1xi1>
    %167 = vector.broadcast %166 : vector<8x1xi1> to vector<8x9xi1>
    %168 = arith.select %167, %165, %164 : vector<8x9xi1>, vector<8x9xf32>
    %169 = vector.extract_strided_slice %168 {offsets = [0, 0], sizes = [8, 8], strides = [1, 1]} : vector<8x9xf32> to vector<8x8xf32>
    %170 = arith.addf %149, %169 : vector<8x8xf32>
    %cst_65 = arith.constant 0.353553385 : f32
    %171 = vector.broadcast %cst_65 : f32 to vector<8x8xf32>
    %172 = arith.mulf %170, %171 : vector<8x8xf32>
    %cst_66 = arith.constant dense<0xFF800000> : vector<8xf32>
    %173 = vector.multi_reduction <maximumf>, %172, %cst_66 [1] : vector<8x8xf32> to vector<8xf32>
    %174 = vector.shape_cast %173 : vector<8xf32> to vector<8x1xf32>
    %175 = vector.broadcast %174 : vector<8x1xf32> to vector<8x8xf32>
    %176 = arith.subf %172, %175 : vector<8x8xf32>
    %177 = math.exp %176 : vector<8x8xf32>
    %cst_67 = arith.constant dense<0.000000e+00> : vector<8xf32>
    %178 = vector.multi_reduction <add>, %177, %cst_67 [1] : vector<8x8xf32> to vector<8xf32>
    %179 = vector.shape_cast %178 : vector<8xf32> to vector<8x1xf32>
    %180 = tpu.reciprocal %179 {approx = true} : vector<8x1xf32> -> vector<8x1xf32>
    %181 = vector.broadcast %180 : vector<8x1xf32> to vector<8x8xf32>
    %182 = arith.mulf %177, %181 : vector<8x8xf32>
    %cst_68 = arith.constant dense<0.000000e+00> : vector<8x8xf32>
    %183 = tpu.matmul %182, %147, %cst_68 {dimension_numbers = #tpu.dot_dimension_numbers<[1], [0], [0], [1], [0, 0, 1, 1], [], []>} : vector<8x8xf32>, vector<8x8xf32>, vector<8x8xf32> -> vector<8x8xf32>
    %184 = vector.extract_strided_slice %3 {offsets = [8, 0], sizes = [8, 32], strides = [1, 1]} : vector<32x32xf32> to vector<8x32xf32>
    %cst_69 = arith.constant dense<0.000000e+00> : vector<8x32xf32>
    %185 = tpu.matmul %183, %184, %cst_69 {dimension_numbers = #tpu.dot_dimension_numbers<[1], [0], [0], [1], [0, 0, 1, 1], [], []>} : vector<8x8xf32>, vector<8x32xf32>, vector<8x32xf32> -> vector<8x32xf32>
    %186 = arith.addf %142, %185 : vector<8x32xf32>
    %187 = vector.extract_strided_slice %94 {offsets = [0, 16], sizes = [8, 8], strides = [1, 1]} : vector<8x32xf32> to vector<8x8xf32>
    %188 = vector.extract_strided_slice %96 {offsets = [0, 16], sizes = [8, 8], strides = [1, 1]} : vector<8x32xf32> to vector<8x8xf32>
    %189 = vector.extract_strided_slice %97 {offsets = [0, 16], sizes = [8, 8], strides = [1, 1]} : vector<8x32xf32> to vector<8x8xf32>
    %190 = vector.extract_strided_slice %90 {offsets = [0, 16], sizes = [8, 8], strides = [1, 1]} : vector<8x32xf32> to vector<8x8xf32>
    %191 = vector.extract_strided_slice %91 {offsets = [0, 16], sizes = [8, 8], strides = [1, 1]} : vector<8x32xf32> to vector<8x8xf32>
    %192 = vector.extract_strided_slice %92 {offsets = [0, 16], sizes = [9, 8], strides = [1, 1]} : vector<9x32xf32> to vector<9x8xf32>
    %cst_70 = arith.constant dense<0.000000e+00> : vector<8x8xf32>
    %193 = tpu.matmul %187, %190, %cst_70 {dimension_numbers = #tpu.dot_dimension_numbers<[1], [1], [0], [0], [0, 0, 1, 0], [], []>} : vector<8x8xf32>, vector<8x8xf32>, vector<8x8xf32> -> vector<8x8xf32>
    %cst_71 = arith.constant dense<0.000000e+00> : vector<8x9xf32>
    %194 = tpu.matmul %188, %192, %cst_71 {dimension_numbers = #tpu.dot_dimension_numbers<[1], [1], [0], [0], [0, 0, 1, 0], [], []>} : vector<8x8xf32>, vector<9x8xf32>, vector<8x9xf32> -> vector<8x9xf32>
    %cst_72 = arith.constant dense<0.000000e+00> : vector<8x9xf32>
    %195 = tpu.matmul %189, %192, %cst_72 {dimension_numbers = #tpu.dot_dimension_numbers<[1], [1], [0], [0], [0, 0, 1, 0], [], []>} : vector<8x8xf32>, vector<9x8xf32>, vector<8x9xf32> -> vector<8x9xf32>
    %196 = arith.select %84, %195, %194 : vector<8x9xi1>, vector<8x9xf32>
    %cst_73 = arith.constant dense<0.000000e+00> : vector<8x9xf32>
    %197 = tpu.matmul %196, %30, %cst_73 {dimension_numbers = #tpu.dot_dimension_numbers<[1], [0], [0], [1], [0, 0, 1, 1], [], []>} : vector<8x9xf32>, vector<9x9xf32>, vector<8x9xf32> -> vector<8x9xf32>
    %198 = vector.shape_cast %67 : vector<8x1xi1> to vector<8x1xi1>
    %199 = vector.broadcast %198 : vector<8x1xi1> to vector<8x9xi1>
    %200 = arith.select %199, %197, %196 : vector<8x9xi1>, vector<8x9xf32>
    %cst_74 = arith.constant dense<0.000000e+00> : vector<8x9xf32>
    %201 = tpu.matmul %200, %40, %cst_74 {dimension_numbers = #tpu.dot_dimension_numbers<[1], [0], [0], [1], [0, 0, 1, 1], [], []>} : vector<8x9xf32>, vector<9x9xf32>, vector<8x9xf32> -> vector<8x9xf32>
    %202 = vector.shape_cast %71 : vector<8x1xi1> to vector<8x1xi1>
    %203 = vector.broadcast %202 : vector<8x1xi1> to vector<8x9xi1>
    %204 = arith.select %203, %201, %200 : vector<8x9xi1>, vector<8x9xf32>
    %cst_75 = arith.constant dense<0.000000e+00> : vector<8x9xf32>
    %205 = tpu.matmul %204, %50, %cst_75 {dimension_numbers = #tpu.dot_dimension_numbers<[1], [0], [0], [1], [0, 0, 1, 1], [], []>} : vector<8x9xf32>, vector<9x9xf32>, vector<8x9xf32> -> vector<8x9xf32>
    %206 = vector.shape_cast %75 : vector<8x1xi1> to vector<8x1xi1>
    %207 = vector.broadcast %206 : vector<8x1xi1> to vector<8x9xi1>
    %208 = arith.select %207, %205, %204 : vector<8x9xi1>, vector<8x9xf32>
    %cst_76 = arith.constant dense<0.000000e+00> : vector<8x9xf32>
    %209 = tpu.matmul %208, %60, %cst_76 {dimension_numbers = #tpu.dot_dimension_numbers<[1], [0], [0], [1], [0, 0, 1, 1], [], []>} : vector<8x9xf32>, vector<9x9xf32>, vector<8x9xf32> -> vector<8x9xf32>
    %210 = vector.shape_cast %79 : vector<8x1xi1> to vector<8x1xi1>
    %211 = vector.broadcast %210 : vector<8x1xi1> to vector<8x9xi1>
    %212 = arith.select %211, %209, %208 : vector<8x9xi1>, vector<8x9xf32>
    %213 = vector.extract_strided_slice %212 {offsets = [0, 0], sizes = [8, 8], strides = [1, 1]} : vector<8x9xf32> to vector<8x8xf32>
    %214 = arith.addf %193, %213 : vector<8x8xf32>
    %cst_77 = arith.constant 0.353553385 : f32
    %215 = vector.broadcast %cst_77 : f32 to vector<8x8xf32>
    %216 = arith.mulf %214, %215 : vector<8x8xf32>
    %cst_78 = arith.constant dense<0xFF800000> : vector<8xf32>
    %217 = vector.multi_reduction <maximumf>, %216, %cst_78 [1] : vector<8x8xf32> to vector<8xf32>
    %218 = vector.shape_cast %217 : vector<8xf32> to vector<8x1xf32>
    %219 = vector.broadcast %218 : vector<8x1xf32> to vector<8x8xf32>
    %220 = arith.subf %216, %219 : vector<8x8xf32>
    %221 = math.exp %220 : vector<8x8xf32>
    %cst_79 = arith.constant dense<0.000000e+00> : vector<8xf32>
    %222 = vector.multi_reduction <add>, %221, %cst_79 [1] : vector<8x8xf32> to vector<8xf32>
    %223 = vector.shape_cast %222 : vector<8xf32> to vector<8x1xf32>
    %224 = tpu.reciprocal %223 {approx = true} : vector<8x1xf32> -> vector<8x1xf32>
    %225 = vector.broadcast %224 : vector<8x1xf32> to vector<8x8xf32>
    %226 = arith.mulf %221, %225 : vector<8x8xf32>
    %cst_80 = arith.constant dense<0.000000e+00> : vector<8x8xf32>
    %227 = tpu.matmul %226, %191, %cst_80 {dimension_numbers = #tpu.dot_dimension_numbers<[1], [0], [0], [1], [0, 0, 1, 1], [], []>} : vector<8x8xf32>, vector<8x8xf32>, vector<8x8xf32> -> vector<8x8xf32>
    %228 = vector.extract_strided_slice %3 {offsets = [16, 0], sizes = [8, 32], strides = [1, 1]} : vector<32x32xf32> to vector<8x32xf32>
    %cst_81 = arith.constant dense<0.000000e+00> : vector<8x32xf32>
    %229 = tpu.matmul %227, %228, %cst_81 {dimension_numbers = #tpu.dot_dimension_numbers<[1], [0], [0], [1], [0, 0, 1, 1], [], []>} : vector<8x8xf32>, vector<8x32xf32>, vector<8x32xf32> -> vector<8x32xf32>
    %230 = arith.addf %186, %229 : vector<8x32xf32>
    %231 = vector.extract_strided_slice %94 {offsets = [0, 24], sizes = [8, 8], strides = [1, 1]} : vector<8x32xf32> to vector<8x8xf32>
    %232 = vector.extract_strided_slice %96 {offsets = [0, 24], sizes = [8, 8], strides = [1, 1]} : vector<8x32xf32> to vector<8x8xf32>
    %233 = vector.extract_strided_slice %97 {offsets = [0, 24], sizes = [8, 8], strides = [1, 1]} : vector<8x32xf32> to vector<8x8xf32>
    %234 = vector.extract_strided_slice %90 {offsets = [0, 24], sizes = [8, 8], strides = [1, 1]} : vector<8x32xf32> to vector<8x8xf32>
    %235 = vector.extract_strided_slice %91 {offsets = [0, 24], sizes = [8, 8], strides = [1, 1]} : vector<8x32xf32> to vector<8x8xf32>
    %236 = vector.extract_strided_slice %92 {offsets = [0, 24], sizes = [9, 8], strides = [1, 1]} : vector<9x32xf32> to vector<9x8xf32>
    %cst_82 = arith.constant dense<0.000000e+00> : vector<8x8xf32>
    %237 = tpu.matmul %231, %234, %cst_82 {dimension_numbers = #tpu.dot_dimension_numbers<[1], [1], [0], [0], [0, 0, 1, 0], [], []>} : vector<8x8xf32>, vector<8x8xf32>, vector<8x8xf32> -> vector<8x8xf32>
    %cst_83 = arith.constant dense<0.000000e+00> : vector<8x9xf32>
    %238 = tpu.matmul %232, %236, %cst_83 {dimension_numbers = #tpu.dot_dimension_numbers<[1], [1], [0], [0], [0, 0, 1, 0], [], []>} : vector<8x8xf32>, vector<9x8xf32>, vector<8x9xf32> -> vector<8x9xf32>
    %cst_84 = arith.constant dense<0.000000e+00> : vector<8x9xf32>
    %239 = tpu.matmul %233, %236, %cst_84 {dimension_numbers = #tpu.dot_dimension_numbers<[1], [1], [0], [0], [0, 0, 1, 0], [], []>} : vector<8x8xf32>, vector<9x8xf32>, vector<8x9xf32> -> vector<8x9xf32>
    %240 = arith.select %84, %239, %238 : vector<8x9xi1>, vector<8x9xf32>
    %cst_85 = arith.constant dense<0.000000e+00> : vector<8x9xf32>
    %241 = tpu.matmul %240, %30, %cst_85 {dimension_numbers = #tpu.dot_dimension_numbers<[1], [0], [0], [1], [0, 0, 1, 1], [], []>} : vector<8x9xf32>, vector<9x9xf32>, vector<8x9xf32> -> vector<8x9xf32>
    %242 = vector.shape_cast %67 : vector<8x1xi1> to vector<8x1xi1>
    %243 = vector.broadcast %242 : vector<8x1xi1> to vector<8x9xi1>
    %244 = arith.select %243, %241, %240 : vector<8x9xi1>, vector<8x9xf32>
    %cst_86 = arith.constant dense<0.000000e+00> : vector<8x9xf32>
    %245 = tpu.matmul %244, %40, %cst_86 {dimension_numbers = #tpu.dot_dimension_numbers<[1], [0], [0], [1], [0, 0, 1, 1], [], []>} : vector<8x9xf32>, vector<9x9xf32>, vector<8x9xf32> -> vector<8x9xf32>
    %246 = vector.shape_cast %71 : vector<8x1xi1> to vector<8x1xi1>
    %247 = vector.broadcast %246 : vector<8x1xi1> to vector<8x9xi1>
    %248 = arith.select %247, %245, %244 : vector<8x9xi1>, vector<8x9xf32>
    %cst_87 = arith.constant dense<0.000000e+00> : vector<8x9xf32>
    %249 = tpu.matmul %248, %50, %cst_87 {dimension_numbers = #tpu.dot_dimension_numbers<[1], [0], [0], [1], [0, 0, 1, 1], [], []>} : vector<8x9xf32>, vector<9x9xf32>, vector<8x9xf32> -> vector<8x9xf32>
    %250 = vector.shape_cast %75 : vector<8x1xi1> to vector<8x1xi1>
    %251 = vector.broadcast %250 : vector<8x1xi1> to vector<8x9xi1>
    %252 = arith.select %251, %249, %248 : vector<8x9xi1>, vector<8x9xf32>
    %cst_88 = arith.constant dense<0.000000e+00> : vector<8x9xf32>
    %253 = tpu.matmul %252, %60, %cst_88 {dimension_numbers = #tpu.dot_dimension_numbers<[1], [0], [0], [1], [0, 0, 1, 1], [], []>} : vector<8x9xf32>, vector<9x9xf32>, vector<8x9xf32> -> vector<8x9xf32>
    %254 = vector.shape_cast %79 : vector<8x1xi1> to vector<8x1xi1>
    %255 = vector.broadcast %254 : vector<8x1xi1> to vector<8x9xi1>
    %256 = arith.select %255, %253, %252 : vector<8x9xi1>, vector<8x9xf32>
    %257 = vector.extract_strided_slice %256 {offsets = [0, 0], sizes = [8, 8], strides = [1, 1]} : vector<8x9xf32> to vector<8x8xf32>
    %258 = arith.addf %237, %257 : vector<8x8xf32>
    %cst_89 = arith.constant 0.353553385 : f32
    %259 = vector.broadcast %cst_89 : f32 to vector<8x8xf32>
    %260 = arith.mulf %258, %259 : vector<8x8xf32>
    %cst_90 = arith.constant dense<0xFF800000> : vector<8xf32>
    %261 = vector.multi_reduction <maximumf>, %260, %cst_90 [1] : vector<8x8xf32> to vector<8xf32>
    %262 = vector.shape_cast %261 : vector<8xf32> to vector<8x1xf32>
    %263 = vector.broadcast %262 : vector<8x1xf32> to vector<8x8xf32>
    %264 = arith.subf %260, %263 : vector<8x8xf32>
    %265 = math.exp %264 : vector<8x8xf32>
    %cst_91 = arith.constant dense<0.000000e+00> : vector<8xf32>
    %266 = vector.multi_reduction <add>, %265, %cst_91 [1] : vector<8x8xf32> to vector<8xf32>
    %267 = vector.shape_cast %266 : vector<8xf32> to vector<8x1xf32>
    %268 = tpu.reciprocal %267 {approx = true} : vector<8x1xf32> -> vector<8x1xf32>
    %269 = vector.broadcast %268 : vector<8x1xf32> to vector<8x8xf32>
    %270 = arith.mulf %265, %269 : vector<8x8xf32>
    %cst_92 = arith.constant dense<0.000000e+00> : vector<8x8xf32>
    %271 = tpu.matmul %270, %235, %cst_92 {dimension_numbers = #tpu.dot_dimension_numbers<[1], [0], [0], [1], [0, 0, 1, 1], [], []>} : vector<8x8xf32>, vector<8x8xf32>, vector<8x8xf32> -> vector<8x8xf32>
    %272 = vector.extract_strided_slice %3 {offsets = [24, 0], sizes = [8, 32], strides = [1, 1]} : vector<32x32xf32> to vector<8x32xf32>
    %cst_93 = arith.constant dense<0.000000e+00> : vector<8x32xf32>
    %273 = tpu.matmul %271, %272, %cst_93 {dimension_numbers = #tpu.dot_dimension_numbers<[1], [0], [0], [1], [0, 0, 1, 1], [], []>} : vector<8x8xf32>, vector<8x32xf32>, vector<8x32xf32> -> vector<8x32xf32>
    %274 = arith.addf %230, %273 : vector<8x32xf32>
    %275 = arith.addf %85, %274 : vector<8x32xf32>
    %cst_94 = arith.constant dense<0.000000e+00> : vector<8xf32>
    %276 = vector.multi_reduction <add>, %275, %cst_94 [1] : vector<8x32xf32> to vector<8xf32>
    %277 = vector.shape_cast %276 : vector<8xf32> to vector<8x1xf32>
    %cst_95 = arith.constant 3.200000e+01 : f32
    %278 = vector.broadcast %cst_95 : f32 to vector<8x1xf32>
    %279 = arith.divf %277, %278 : vector<8x1xf32>
    %280 = vector.broadcast %279 : vector<8x1xf32> to vector<8x32xf32>
    %281 = arith.subf %275, %280 : vector<8x32xf32>
    %282 = arith.mulf %281, %281 : vector<8x32xf32>
    %cst_96 = arith.constant dense<0.000000e+00> : vector<8xf32>
    %283 = vector.multi_reduction <add>, %282, %cst_96 [1] : vector<8x32xf32> to vector<8xf32>
    %284 = vector.shape_cast %283 : vector<8xf32> to vector<8x1xf32>
    %cst_97 = arith.constant 3.200000e+01 : f32
    %285 = vector.broadcast %cst_97 : f32 to vector<8x1xf32>
    %286 = arith.divf %284, %285 : vector<8x1xf32>
    %cst_98 = arith.constant 9.99999974E-6 : f32
    %287 = vector.broadcast %cst_98 : f32 to vector<8x1xf32>
    %288 = arith.addf %286, %287 : vector<8x1xf32>
    %289 = math.rsqrt %288 : vector<8x1xf32>
    %290 = vector.broadcast %289 : vector<8x1xf32> to vector<8x32xf32>
    %291 = arith.mulf %281, %290 : vector<8x32xf32>
    %292 = vector.broadcast %8 : vector<1x32xf32> to vector<8x32xf32>
    %293 = arith.mulf %291, %292 : vector<8x32xf32>
    %294 = vector.broadcast %9 : vector<1x32xf32> to vector<8x32xf32>
    %295 = arith.addf %293, %294 : vector<8x32xf32>
    %cst_99 = arith.constant dense<0.000000e+00> : vector<8x64xf32>
    %296 = tpu.matmul %295, %4, %cst_99 {dimension_numbers = #tpu.dot_dimension_numbers<[1], [0], [0], [1], [0, 0, 1, 1], [], []>} : vector<8x32xf32>, vector<32x64xf32>, vector<8x64xf32> -> vector<8x64xf32>
    %297 = vector.broadcast %5 : vector<1x64xf32> to vector<8x64xf32>
    %298 = arith.addf %296, %297 : vector<8x64xf32>
    %cst_100 = arith.constant 5.000000e-01 : f32
    %299 = vector.broadcast %cst_100 : f32 to vector<8x64xf32>
    %300 = arith.mulf %299, %298 : vector<8x64xf32>
    %cst_101 = arith.constant 4.471500e-02 : f32
    %301 = vector.broadcast %cst_101 : f32 to vector<8x64xf32>
    %302 = arith.mulf %301, %298 : vector<8x64xf32>
    %303 = arith.mulf %302, %298 : vector<8x64xf32>
    %304 = arith.mulf %303, %298 : vector<8x64xf32>
    %305 = arith.addf %298, %304 : vector<8x64xf32>
    %cst_102 = arith.constant 0.797884583 : f32
    %306 = vector.broadcast %cst_102 : f32 to vector<8x64xf32>
    %307 = arith.mulf %306, %305 : vector<8x64xf32>
    %308 = math.tanh %307 : vector<8x64xf32>
    %cst_103 = arith.constant 1.000000e+00 : f32
    %309 = vector.broadcast %cst_103 : f32 to vector<8x64xf32>
    %310 = arith.addf %309, %308 : vector<8x64xf32>
    %311 = arith.mulf %300, %310 : vector<8x64xf32>
    %cst_104 = arith.constant dense<0.000000e+00> : vector<8x32xf32>
    %312 = tpu.matmul %311, %6, %cst_104 {dimension_numbers = #tpu.dot_dimension_numbers<[1], [0], [0], [1], [0, 0, 1, 1], [], []>} : vector<8x64xf32>, vector<64x32xf32>, vector<8x32xf32> -> vector<8x32xf32>
    %313 = vector.broadcast %7 : vector<1x32xf32> to vector<8x32xf32>
    %314 = arith.addf %312, %313 : vector<8x32xf32>
    %315 = arith.addf %295, %314 : vector<8x32xf32>
    %cst_105 = arith.constant dense<0.000000e+00> : vector<8xf32>
    %316 = vector.multi_reduction <add>, %315, %cst_105 [1] : vector<8x32xf32> to vector<8xf32>
    %317 = vector.shape_cast %316 : vector<8xf32> to vector<8x1xf32>
    %cst_106 = arith.constant 3.200000e+01 : f32
    %318 = vector.broadcast %cst_106 : f32 to vector<8x1xf32>
    %319 = arith.divf %317, %318 : vector<8x1xf32>
    %320 = vector.broadcast %319 : vector<8x1xf32> to vector<8x32xf32>
    %321 = arith.subf %315, %320 : vector<8x32xf32>
    %322 = arith.mulf %321, %321 : vector<8x32xf32>
    %cst_107 = arith.constant dense<0.000000e+00> : vector<8xf32>
    %323 = vector.multi_reduction <add>, %322, %cst_107 [1] : vector<8x32xf32> to vector<8xf32>
    %324 = vector.shape_cast %323 : vector<8xf32> to vector<8x1xf32>
    %cst_108 = arith.constant 3.200000e+01 : f32
    %325 = vector.broadcast %cst_108 : f32 to vector<8x1xf32>
    %326 = arith.divf %324, %325 : vector<8x1xf32>
    %cst_109 = arith.constant 9.99999974E-6 : f32
    %327 = vector.broadcast %cst_109 : f32 to vector<8x1xf32>
    %328 = arith.addf %326, %327 : vector<8x1xf32>
    %329 = math.rsqrt %328 : vector<8x1xf32>
    %330 = vector.broadcast %329 : vector<8x1xf32> to vector<8x32xf32>
    %331 = arith.mulf %321, %330 : vector<8x32xf32>
    %332 = vector.broadcast %10 : vector<1x32xf32> to vector<8x32xf32>
    %333 = arith.mulf %331, %332 : vector<8x32xf32>
    %334 = vector.broadcast %11 : vector<1x32xf32> to vector<8x32xf32>
    %335 = arith.addf %333, %334 : vector<8x32xf32>
    %c0_110 = arith.constant 0 : index
    %c0_111 = arith.constant 0 : index
    %336 = vector.load %arg14[%c0_110, %c0_111] : memref<8x64xf32, #tpu.memory_space<vmem>>, vector<8x32xf32>
    tpu.vector_store %arg14[%c0_110, %c0_111], %335 {strides = array<i32>} : memref<8x64xf32, #tpu.memory_space<vmem>>, vector<8x32xf32>,
    %c0_112 = arith.constant 0 : index
    %c32 = arith.constant 32 : index
    %337 = vector.load %arg0[%c0_112, %c32] : memref<8x64xf32, #tpu.memory_space<vmem>>, vector<8x32xf32>
    %c0_113 = arith.constant 0 : index
    %c32_114 = arith.constant 32 : index
    %338 = vector.load %arg1[%c0_113, %c32_114] : memref<9x64xf32, #tpu.memory_space<vmem>>, vector<9x32xf32>
    %cst_115 = arith.constant dense<0.000000e+00> : vector<8x128xf32>
    %339 = tpu.matmul %337, %0, %cst_115 {dimension_numbers = #tpu.dot_dimension_numbers<[1], [0], [0], [1], [0, 0, 1, 1], [], []>} : vector<8x32xf32>, vector<32x128xf32>, vector<8x128xf32> -> vector<8x128xf32>
    %cst_116 = arith.constant dense<0.000000e+00> : vector<9x128xf32>
    %340 = tpu.matmul %338, %0, %cst_116 {dimension_numbers = #tpu.dot_dimension_numbers<[1], [0], [0], [1], [0, 0, 1, 1], [], []>} : vector<9x32xf32>, vector<32x128xf32>, vector<9x128xf32> -> vector<9x128xf32>
    %341 = vector.extract_strided_slice %339 {offsets = [0, 0], sizes = [8, 32], strides = [1, 1]} : vector<8x128xf32> to vector<8x32xf32>
    %342 = vector.extract_strided_slice %339 {offsets = [0, 32], sizes = [8, 32], strides = [1, 1]} : vector<8x128xf32> to vector<8x32xf32>
    %343 = vector.extract_strided_slice %339 {offsets = [0, 64], sizes = [8, 32], strides = [1, 1]} : vector<8x128xf32> to vector<8x32xf32>
    %344 = vector.extract_strided_slice %340 {offsets = [0, 96], sizes = [9, 32], strides = [1, 1]} : vector<9x128xf32> to vector<9x32xf32>
    %345 = vector.broadcast %1 : vector<1x32xf32> to vector<8x32xf32>
    %346 = arith.addf %341, %345 : vector<8x32xf32>
    %347 = vector.broadcast %2 : vector<1x32xf32> to vector<8x32xf32>
    %348 = arith.addf %341, %347 : vector<8x32xf32>
    %cst_117 = arith.constant dense<0.000000e+00> : vector<8x32xf32>
    %349 = tpu.matmul %18, %348, %cst_117 {dimension_numbers = #tpu.dot_dimension_numbers<[1], [0], [0], [1], [0, 0, 1, 1], [], []>} : vector<8x8xf32>, vector<8x32xf32>, vector<8x32xf32> -> vector<8x32xf32>
    %cst_118 = arith.constant 0.000000e+00 : f32
    %350 = vector.broadcast %cst_118 : f32 to vector<8x32xf32>
    %351 = vector.extract_strided_slice %346 {offsets = [0, 0], sizes = [8, 8], strides = [1, 1]} : vector<8x32xf32> to vector<8x8xf32>
    %352 = vector.extract_strided_slice %348 {offsets = [0, 0], sizes = [8, 8], strides = [1, 1]} : vector<8x32xf32> to vector<8x8xf32>
    %353 = vector.extract_strided_slice %349 {offsets = [0, 0], sizes = [8, 8], strides = [1, 1]} : vector<8x32xf32> to vector<8x8xf32>
    %354 = vector.extract_strided_slice %342 {offsets = [0, 0], sizes = [8, 8], strides = [1, 1]} : vector<8x32xf32> to vector<8x8xf32>
    %355 = vector.extract_strided_slice %343 {offsets = [0, 0], sizes = [8, 8], strides = [1, 1]} : vector<8x32xf32> to vector<8x8xf32>
    %356 = vector.extract_strided_slice %344 {offsets = [0, 0], sizes = [9, 8], strides = [1, 1]} : vector<9x32xf32> to vector<9x8xf32>
    %cst_119 = arith.constant dense<0.000000e+00> : vector<8x8xf32>
    %357 = tpu.matmul %351, %354, %cst_119 {dimension_numbers = #tpu.dot_dimension_numbers<[1], [1], [0], [0], [0, 0, 1, 0], [], []>} : vector<8x8xf32>, vector<8x8xf32>, vector<8x8xf32> -> vector<8x8xf32>
    %cst_120 = arith.constant dense<0.000000e+00> : vector<8x9xf32>
    %358 = tpu.matmul %352, %356, %cst_120 {dimension_numbers = #tpu.dot_dimension_numbers<[1], [1], [0], [0], [0, 0, 1, 0], [], []>} : vector<8x8xf32>, vector<9x8xf32>, vector<8x9xf32> -> vector<8x9xf32>
    %cst_121 = arith.constant dense<0.000000e+00> : vector<8x9xf32>
    %359 = tpu.matmul %353, %356, %cst_121 {dimension_numbers = #tpu.dot_dimension_numbers<[1], [1], [0], [0], [0, 0, 1, 0], [], []>} : vector<8x8xf32>, vector<9x8xf32>, vector<8x9xf32> -> vector<8x9xf32>
    %360 = arith.select %84, %359, %358 : vector<8x9xi1>, vector<8x9xf32>
    %cst_122 = arith.constant dense<0.000000e+00> : vector<8x9xf32>
    %361 = tpu.matmul %360, %30, %cst_122 {dimension_numbers = #tpu.dot_dimension_numbers<[1], [0], [0], [1], [0, 0, 1, 1], [], []>} : vector<8x9xf32>, vector<9x9xf32>, vector<8x9xf32> -> vector<8x9xf32>
    %362 = vector.shape_cast %67 : vector<8x1xi1> to vector<8x1xi1>
    %363 = vector.broadcast %362 : vector<8x1xi1> to vector<8x9xi1>
    %364 = arith.select %363, %361, %360 : vector<8x9xi1>, vector<8x9xf32>
    %cst_123 = arith.constant dense<0.000000e+00> : vector<8x9xf32>
    %365 = tpu.matmul %364, %40, %cst_123 {dimension_numbers = #tpu.dot_dimension_numbers<[1], [0], [0], [1], [0, 0, 1, 1], [], []>} : vector<8x9xf32>, vector<9x9xf32>, vector<8x9xf32> -> vector<8x9xf32>
    %366 = vector.shape_cast %71 : vector<8x1xi1> to vector<8x1xi1>
    %367 = vector.broadcast %366 : vector<8x1xi1> to vector<8x9xi1>
    %368 = arith.select %367, %365, %364 : vector<8x9xi1>, vector<8x9xf32>
    %cst_124 = arith.constant dense<0.000000e+00> : vector<8x9xf32>
    %369 = tpu.matmul %368, %50, %cst_124 {dimension_numbers = #tpu.dot_dimension_numbers<[1], [0], [0], [1], [0, 0, 1, 1], [], []>} : vector<8x9xf32>, vector<9x9xf32>, vector<8x9xf32> -> vector<8x9xf32>
    %370 = vector.shape_cast %75 : vector<8x1xi1> to vector<8x1xi1>
    %371 = vector.broadcast %370 : vector<8x1xi1> to vector<8x9xi1>
    %372 = arith.select %371, %369, %368 : vector<8x9xi1>, vector<8x9xf32>
    %cst_125 = arith.constant dense<0.000000e+00> : vector<8x9xf32>
    %373 = tpu.matmul %372, %60, %cst_125 {dimension_numbers = #tpu.dot_dimension_numbers<[1], [0], [0], [1], [0, 0, 1, 1], [], []>} : vector<8x9xf32>, vector<9x9xf32>, vector<8x9xf32> -> vector<8x9xf32>
    %374 = vector.shape_cast %79 : vector<8x1xi1> to vector<8x1xi1>
    %375 = vector.broadcast %374 : vector<8x1xi1> to vector<8x9xi1>
    %376 = arith.select %375, %373, %372 : vector<8x9xi1>, vector<8x9xf32>
    %377 = vector.extract_strided_slice %376 {offsets = [0, 0], sizes = [8, 8], strides = [1, 1]} : vector<8x9xf32> to vector<8x8xf32>
    %378 = arith.addf %357, %377 : vector<8x8xf32>
    %cst_126 = arith.constant 0.353553385 : f32
    %379 = vector.broadcast %cst_126 : f32 to vector<8x8xf32>
    %380 = arith.mulf %378, %379 : vector<8x8xf32>
    %cst_127 = arith.constant dense<0xFF800000> : vector<8xf32>
    %381 = vector.multi_reduction <maximumf>, %380, %cst_127 [1] : vector<8x8xf32> to vector<8xf32>
    %382 = vector.shape_cast %381 : vector<8xf32> to vector<8x1xf32>
    %383 = vector.broadcast %382 : vector<8x1xf32> to vector<8x8xf32>
    %384 = arith.subf %380, %383 : vector<8x8xf32>
    %385 = math.exp %384 : vector<8x8xf32>
    %cst_128 = arith.constant dense<0.000000e+00> : vector<8xf32>
    %386 = vector.multi_reduction <add>, %385, %cst_128 [1] : vector<8x8xf32> to vector<8xf32>
    %387 = vector.shape_cast %386 : vector<8xf32> to vector<8x1xf32>
    %388 = tpu.reciprocal %387 {approx = true} : vector<8x1xf32> -> vector<8x1xf32>
    %389 = vector.broadcast %388 : vector<8x1xf32> to vector<8x8xf32>
    %390 = arith.mulf %385, %389 : vector<8x8xf32>
    %cst_129 = arith.constant dense<0.000000e+00> : vector<8x8xf32>
    %391 = tpu.matmul %390, %355, %cst_129 {dimension_numbers = #tpu.dot_dimension_numbers<[1], [0], [0], [1], [0, 0, 1, 1], [], []>} : vector<8x8xf32>, vector<8x8xf32>, vector<8x8xf32> -> vector<8x8xf32>
    %392 = vector.extract_strided_slice %3 {offsets = [0, 0], sizes = [8, 32], strides = [1, 1]} : vector<32x32xf32> to vector<8x32xf32>
    %cst_130 = arith.constant dense<0.000000e+00> : vector<8x32xf32>
    %393 = tpu.matmul %391, %392, %cst_130 {dimension_numbers = #tpu.dot_dimension_numbers<[1], [0], [0], [1], [0, 0, 1, 1], [], []>} : vector<8x8xf32>, vector<8x32xf32>, vector<8x32xf32> -> vector<8x32xf32>
    %394 = arith.addf %350, %393 : vector<8x32xf32>
    %395 = vector.extract_strided_slice %346 {offsets = [0, 8], sizes = [8, 8], strides = [1, 1]} : vector<8x32xf32> to vector<8x8xf32>
    %396 = vector.extract_strided_slice %348 {offsets = [0, 8], sizes = [8, 8], strides = [1, 1]} : vector<8x32xf32> to vector<8x8xf32>
    %397 = vector.extract_strided_slice %349 {offsets = [0, 8], sizes = [8, 8], strides = [1, 1]} : vector<8x32xf32> to vector<8x8xf32>
    %398 = vector.extract_strided_slice %342 {offsets = [0, 8], sizes = [8, 8], strides = [1, 1]} : vector<8x32xf32> to vector<8x8xf32>
    %399 = vector.extract_strided_slice %343 {offsets = [0, 8], sizes = [8, 8], strides = [1, 1]} : vector<8x32xf32> to vector<8x8xf32>
    %400 = vector.extract_strided_slice %344 {offsets = [0, 8], sizes = [9, 8], strides = [1, 1]} : vector<9x32xf32> to vector<9x8xf32>
    %cst_131 = arith.constant dense<0.000000e+00> : vector<8x8xf32>
    %401 = tpu.matmul %395, %398, %cst_131 {dimension_numbers = #tpu.dot_dimension_numbers<[1], [1], [0], [0], [0, 0, 1, 0], [], []>} : vector<8x8xf32>, vector<8x8xf32>, vector<8x8xf32> -> vector<8x8xf32>
    %cst_132 = arith.constant dense<0.000000e+00> : vector<8x9xf32>
    %402 = tpu.matmul %396, %400, %cst_132 {dimension_numbers = #tpu.dot_dimension_numbers<[1], [1], [0], [0], [0, 0, 1, 0], [], []>} : vector<8x8xf32>, vector<9x8xf32>, vector<8x9xf32> -> vector<8x9xf32>
    %cst_133 = arith.constant dense<0.000000e+00> : vector<8x9xf32>
    %403 = tpu.matmul %397, %400, %cst_133 {dimension_numbers = #tpu.dot_dimension_numbers<[1], [1], [0], [0], [0, 0, 1, 0], [], []>} : vector<8x8xf32>, vector<9x8xf32>, vector<8x9xf32> -> vector<8x9xf32>
    %404 = arith.select %84, %403, %402 : vector<8x9xi1>, vector<8x9xf32>
    %cst_134 = arith.constant dense<0.000000e+00> : vector<8x9xf32>
    %405 = tpu.matmul %404, %30, %cst_134 {dimension_numbers = #tpu.dot_dimension_numbers<[1], [0], [0], [1], [0, 0, 1, 1], [], []>} : vector<8x9xf32>, vector<9x9xf32>, vector<8x9xf32> -> vector<8x9xf32>
    %406 = vector.shape_cast %67 : vector<8x1xi1> to vector<8x1xi1>
    %407 = vector.broadcast %406 : vector<8x1xi1> to vector<8x9xi1>
    %408 = arith.select %407, %405, %404 : vector<8x9xi1>, vector<8x9xf32>
    %cst_135 = arith.constant dense<0.000000e+00> : vector<8x9xf32>
    %409 = tpu.matmul %408, %40, %cst_135 {dimension_numbers = #tpu.dot_dimension_numbers<[1], [0], [0], [1], [0, 0, 1, 1], [], []>} : vector<8x9xf32>, vector<9x9xf32>, vector<8x9xf32> -> vector<8x9xf32>
    %410 = vector.shape_cast %71 : vector<8x1xi1> to vector<8x1xi1>
    %411 = vector.broadcast %410 : vector<8x1xi1> to vector<8x9xi1>
    %412 = arith.select %411, %409, %408 : vector<8x9xi1>, vector<8x9xf32>
    %cst_136 = arith.constant dense<0.000000e+00> : vector<8x9xf32>
    %413 = tpu.matmul %412, %50, %cst_136 {dimension_numbers = #tpu.dot_dimension_numbers<[1], [0], [0], [1], [0, 0, 1, 1], [], []>} : vector<8x9xf32>, vector<9x9xf32>, vector<8x9xf32> -> vector<8x9xf32>
    %414 = vector.shape_cast %75 : vector<8x1xi1> to vector<8x1xi1>
    %415 = vector.broadcast %414 : vector<8x1xi1> to vector<8x9xi1>
    %416 = arith.select %415, %413, %412 : vector<8x9xi1>, vector<8x9xf32>
    %cst_137 = arith.constant dense<0.000000e+00> : vector<8x9xf32>
    %417 = tpu.matmul %416, %60, %cst_137 {dimension_numbers = #tpu.dot_dimension_numbers<[1], [0], [0], [1], [0, 0, 1, 1], [], []>} : vector<8x9xf32>, vector<9x9xf32>, vector<8x9xf32> -> vector<8x9xf32>
    %418 = vector.shape_cast %79 : vector<8x1xi1> to vector<8x1xi1>
    %419 = vector.broadcast %418 : vector<8x1xi1> to vector<8x9xi1>
    %420 = arith.select %419, %417, %416 : vector<8x9xi1>, vector<8x9xf32>
    %421 = vector.extract_strided_slice %420 {offsets = [0, 0], sizes = [8, 8], strides = [1, 1]} : vector<8x9xf32> to vector<8x8xf32>
    %422 = arith.addf %401, %421 : vector<8x8xf32>
    %cst_138 = arith.constant 0.353553385 : f32
    %423 = vector.broadcast %cst_138 : f32 to vector<8x8xf32>
    %424 = arith.mulf %422, %423 : vector<8x8xf32>
    %cst_139 = arith.constant dense<0xFF800000> : vector<8xf32>
    %425 = vector.multi_reduction <maximumf>, %424, %cst_139 [1] : vector<8x8xf32> to vector<8xf32>
    %426 = vector.shape_cast %425 : vector<8xf32> to vector<8x1xf32>
    %427 = vector.broadcast %426 : vector<8x1xf32> to vector<8x8xf32>
    %428 = arith.subf %424, %427 : vector<8x8xf32>
    %429 = math.exp %428 : vector<8x8xf32>
    %cst_140 = arith.constant dense<0.000000e+00> : vector<8xf32>
    %430 = vector.multi_reduction <add>, %429, %cst_140 [1] : vector<8x8xf32> to vector<8xf32>
    %431 = vector.shape_cast %430 : vector<8xf32> to vector<8x1xf32>
    %432 = tpu.reciprocal %431 {approx = true} : vector<8x1xf32> -> vector<8x1xf32>
    %433 = vector.broadcast %432 : vector<8x1xf32> to vector<8x8xf32>
    %434 = arith.mulf %429, %433 : vector<8x8xf32>
    %cst_141 = arith.constant dense<0.000000e+00> : vector<8x8xf32>
    %435 = tpu.matmul %434, %399, %cst_141 {dimension_numbers = #tpu.dot_dimension_numbers<[1], [0], [0], [1], [0, 0, 1, 1], [], []>} : vector<8x8xf32>, vector<8x8xf32>, vector<8x8xf32> -> vector<8x8xf32>
    %436 = vector.extract_strided_slice %3 {offsets = [8, 0], sizes = [8, 32], strides = [1, 1]} : vector<32x32xf32> to vector<8x32xf32>
    %cst_142 = arith.constant dense<0.000000e+00> : vector<8x32xf32>
    %437 = tpu.matmul %435, %436, %cst_142 {dimension_numbers = #tpu.dot_dimension_numbers<[1], [0], [0], [1], [0, 0, 1, 1], [], []>} : vector<8x8xf32>, vector<8x32xf32>, vector<8x32xf32> -> vector<8x32xf32>
    %438 = arith.addf %394, %437 : vector<8x32xf32>
    %439 = vector.extract_strided_slice %346 {offsets = [0, 16], sizes = [8, 8], strides = [1, 1]} : vector<8x32xf32> to vector<8x8xf32>
    %440 = vector.extract_strided_slice %348 {offsets = [0, 16], sizes = [8, 8], strides = [1, 1]} : vector<8x32xf32> to vector<8x8xf32>
    %441 = vector.extract_strided_slice %349 {offsets = [0, 16], sizes = [8, 8], strides = [1, 1]} : vector<8x32xf32> to vector<8x8xf32>
    %442 = vector.extract_strided_slice %342 {offsets = [0, 16], sizes = [8, 8], strides = [1, 1]} : vector<8x32xf32> to vector<8x8xf32>
    %443 = vector.extract_strided_slice %343 {offsets = [0, 16], sizes = [8, 8], strides = [1, 1]} : vector<8x32xf32> to vector<8x8xf32>
    %444 = vector.extract_strided_slice %344 {offsets = [0, 16], sizes = [9, 8], strides = [1, 1]} : vector<9x32xf32> to vector<9x8xf32>
    %cst_143 = arith.constant dense<0.000000e+00> : vector<8x8xf32>
    %445 = tpu.matmul %439, %442, %cst_143 {dimension_numbers = #tpu.dot_dimension_numbers<[1], [1], [0], [0], [0, 0, 1, 0], [], []>} : vector<8x8xf32>, vector<8x8xf32>, vector<8x8xf32> -> vector<8x8xf32>
    %cst_144 = arith.constant dense<0.000000e+00> : vector<8x9xf32>
    %446 = tpu.matmul %440, %444, %cst_144 {dimension_numbers = #tpu.dot_dimension_numbers<[1], [1], [0], [0], [0, 0, 1, 0], [], []>} : vector<8x8xf32>, vector<9x8xf32>, vector<8x9xf32> -> vector<8x9xf32>
    %cst_145 = arith.constant dense<0.000000e+00> : vector<8x9xf32>
    %447 = tpu.matmul %441, %444, %cst_145 {dimension_numbers = #tpu.dot_dimension_numbers<[1], [1], [0], [0], [0, 0, 1, 0], [], []>} : vector<8x8xf32>, vector<9x8xf32>, vector<8x9xf32> -> vector<8x9xf32>
    %448 = arith.select %84, %447, %446 : vector<8x9xi1>, vector<8x9xf32>
    %cst_146 = arith.constant dense<0.000000e+00> : vector<8x9xf32>
    %449 = tpu.matmul %448, %30, %cst_146 {dimension_numbers = #tpu.dot_dimension_numbers<[1], [0], [0], [1], [0, 0, 1, 1], [], []>} : vector<8x9xf32>, vector<9x9xf32>, vector<8x9xf32> -> vector<8x9xf32>
    %450 = vector.shape_cast %67 : vector<8x1xi1> to vector<8x1xi1>
    %451 = vector.broadcast %450 : vector<8x1xi1> to vector<8x9xi1>
    %452 = arith.select %451, %449, %448 : vector<8x9xi1>, vector<8x9xf32>
    %cst_147 = arith.constant dense<0.000000e+00> : vector<8x9xf32>
    %453 = tpu.matmul %452, %40, %cst_147 {dimension_numbers = #tpu.dot_dimension_numbers<[1], [0], [0], [1], [0, 0, 1, 1], [], []>} : vector<8x9xf32>, vector<9x9xf32>, vector<8x9xf32> -> vector<8x9xf32>
    %454 = vector.shape_cast %71 : vector<8x1xi1> to vector<8x1xi1>
    %455 = vector.broadcast %454 : vector<8x1xi1> to vector<8x9xi1>
    %456 = arith.select %455, %453, %452 : vector<8x9xi1>, vector<8x9xf32>
    %cst_148 = arith.constant dense<0.000000e+00> : vector<8x9xf32>
    %457 = tpu.matmul %456, %50, %cst_148 {dimension_numbers = #tpu.dot_dimension_numbers<[1], [0], [0], [1], [0, 0, 1, 1], [], []>} : vector<8x9xf32>, vector<9x9xf32>, vector<8x9xf32> -> vector<8x9xf32>
    %458 = vector.shape_cast %75 : vector<8x1xi1> to vector<8x1xi1>
    %459 = vector.broadcast %458 : vector<8x1xi1> to vector<8x9xi1>
    %460 = arith.select %459, %457, %456 : vector<8x9xi1>, vector<8x9xf32>
    %cst_149 = arith.constant dense<0.000000e+00> : vector<8x9xf32>
    %461 = tpu.matmul %460, %60, %cst_149 {dimension_numbers = #tpu.dot_dimension_numbers<[1], [0], [0], [1], [0, 0, 1, 1], [], []>} : vector<8x9xf32>, vector<9x9xf32>, vector<8x9xf32> -> vector<8x9xf32>
    %462 = vector.shape_cast %79 : vector<8x1xi1> to vector<8x1xi1>
    %463 = vector.broadcast %462 : vector<8x1xi1> to vector<8x9xi1>
    %464 = arith.select %463, %461, %460 : vector<8x9xi1>, vector<8x9xf32>
    %465 = vector.extract_strided_slice %464 {offsets = [0, 0], sizes = [8, 8], strides = [1, 1]} : vector<8x9xf32> to vector<8x8xf32>
    %466 = arith.addf %445, %465 : vector<8x8xf32>
    %cst_150 = arith.constant 0.353553385 : f32
    %467 = vector.broadcast %cst_150 : f32 to vector<8x8xf32>
    %468 = arith.mulf %466, %467 : vector<8x8xf32>
    %cst_151 = arith.constant dense<0xFF800000> : vector<8xf32>
    %469 = vector.multi_reduction <maximumf>, %468, %cst_151 [1] : vector<8x8xf32> to vector<8xf32>
    %470 = vector.shape_cast %469 : vector<8xf32> to vector<8x1xf32>
    %471 = vector.broadcast %470 : vector<8x1xf32> to vector<8x8xf32>
    %472 = arith.subf %468, %471 : vector<8x8xf32>
    %473 = math.exp %472 : vector<8x8xf32>
    %cst_152 = arith.constant dense<0.000000e+00> : vector<8xf32>
    %474 = vector.multi_reduction <add>, %473, %cst_152 [1] : vector<8x8xf32> to vector<8xf32>
    %475 = vector.shape_cast %474 : vector<8xf32> to vector<8x1xf32>
    %476 = tpu.reciprocal %475 {approx = true} : vector<8x1xf32> -> vector<8x1xf32>
    %477 = vector.broadcast %476 : vector<8x1xf32> to vector<8x8xf32>
    %478 = arith.mulf %473, %477 : vector<8x8xf32>
    %cst_153 = arith.constant dense<0.000000e+00> : vector<8x8xf32>
    %479 = tpu.matmul %478, %443, %cst_153 {dimension_numbers = #tpu.dot_dimension_numbers<[1], [0], [0], [1], [0, 0, 1, 1], [], []>} : vector<8x8xf32>, vector<8x8xf32>, vector<8x8xf32> -> vector<8x8xf32>
    %480 = vector.extract_strided_slice %3 {offsets = [16, 0], sizes = [8, 32], strides = [1, 1]} : vector<32x32xf32> to vector<8x32xf32>
    %cst_154 = arith.constant dense<0.000000e+00> : vector<8x32xf32>
    %481 = tpu.matmul %479, %480, %cst_154 {dimension_numbers = #tpu.dot_dimension_numbers<[1], [0], [0], [1], [0, 0, 1, 1], [], []>} : vector<8x8xf32>, vector<8x32xf32>, vector<8x32xf32> -> vector<8x32xf32>
    %482 = arith.addf %438, %481 : vector<8x32xf32>
    %483 = vector.extract_strided_slice %346 {offsets = [0, 24], sizes = [8, 8], strides = [1, 1]} : vector<8x32xf32> to vector<8x8xf32>
    %484 = vector.extract_strided_slice %348 {offsets = [0, 24], sizes = [8, 8], strides = [1, 1]} : vector<8x32xf32> to vector<8x8xf32>
    %485 = vector.extract_strided_slice %349 {offsets = [0, 24], sizes = [8, 8], strides = [1, 1]} : vector<8x32xf32> to vector<8x8xf32>
    %486 = vector.extract_strided_slice %342 {offsets = [0, 24], sizes = [8, 8], strides = [1, 1]} : vector<8x32xf32> to vector<8x8xf32>
    %487 = vector.extract_strided_slice %343 {offsets = [0, 24], sizes = [8, 8], strides = [1, 1]} : vector<8x32xf32> to vector<8x8xf32>
    %488 = vector.extract_strided_slice %344 {offsets = [0, 24], sizes = [9, 8], strides = [1, 1]} : vector<9x32xf32> to vector<9x8xf32>
    %cst_155 = arith.constant dense<0.000000e+00> : vector<8x8xf32>
    %489 = tpu.matmul %483, %486, %cst_155 {dimension_numbers = #tpu.dot_dimension_numbers<[1], [1], [0], [0], [0, 0, 1, 0], [], []>} : vector<8x8xf32>, vector<8x8xf32>, vector<8x8xf32> -> vector<8x8xf32>
    %cst_156 = arith.constant dense<0.000000e+00> : vector<8x9xf32>
    %490 = tpu.matmul %484, %488, %cst_156 {dimension_numbers = #tpu.dot_dimension_numbers<[1], [1], [0], [0], [0, 0, 1, 0], [], []>} : vector<8x8xf32>, vector<9x8xf32>, vector<8x9xf32> -> vector<8x9xf32>
    %cst_157 = arith.constant dense<0.000000e+00> : vector<8x9xf32>
    %491 = tpu.matmul %485, %488, %cst_157 {dimension_numbers = #tpu.dot_dimension_numbers<[1], [1], [0], [0], [0, 0, 1, 0], [], []>} : vector<8x8xf32>, vector<9x8xf32>, vector<8x9xf32> -> vector<8x9xf32>
    %492 = arith.select %84, %491, %490 : vector<8x9xi1>, vector<8x9xf32>
    %cst_158 = arith.constant dense<0.000000e+00> : vector<8x9xf32>
    %493 = tpu.matmul %492, %30, %cst_158 {dimension_numbers = #tpu.dot_dimension_numbers<[1], [0], [0], [1], [0, 0, 1, 1], [], []>} : vector<8x9xf32>, vector<9x9xf32>, vector<8x9xf32> -> vector<8x9xf32>
    %494 = vector.shape_cast %67 : vector<8x1xi1> to vector<8x1xi1>
    %495 = vector.broadcast %494 : vector<8x1xi1> to vector<8x9xi1>
    %496 = arith.select %495, %493, %492 : vector<8x9xi1>, vector<8x9xf32>
    %cst_159 = arith.constant dense<0.000000e+00> : vector<8x9xf32>
    %497 = tpu.matmul %496, %40, %cst_159 {dimension_numbers = #tpu.dot_dimension_numbers<[1], [0], [0], [1], [0, 0, 1, 1], [], []>} : vector<8x9xf32>, vector<9x9xf32>, vector<8x9xf32> -> vector<8x9xf32>
    %498 = vector.shape_cast %71 : vector<8x1xi1> to vector<8x1xi1>
    %499 = vector.broadcast %498 : vector<8x1xi1> to vector<8x9xi1>
    %500 = arith.select %499, %497, %496 : vector<8x9xi1>, vector<8x9xf32>
    %cst_160 = arith.constant dense<0.000000e+00> : vector<8x9xf32>
    %501 = tpu.matmul %500, %50, %cst_160 {dimension_numbers = #tpu.dot_dimension_numbers<[1], [0], [0], [1], [0, 0, 1, 1], [], []>} : vector<8x9xf32>, vector<9x9xf32>, vector<8x9xf32> -> vector<8x9xf32>
    %502 = vector.shape_cast %75 : vector<8x1xi1> to vector<8x1xi1>
    %503 = vector.broadcast %502 : vector<8x1xi1> to vector<8x9xi1>
    %504 = arith.select %503, %501, %500 : vector<8x9xi1>, vector<8x9xf32>
    %cst_161 = arith.constant dense<0.000000e+00> : vector<8x9xf32>
    %505 = tpu.matmul %504, %60, %cst_161 {dimension_numbers = #tpu.dot_dimension_numbers<[1], [0], [0], [1], [0, 0, 1, 1], [], []>} : vector<8x9xf32>, vector<9x9xf32>, vector<8x9xf32> -> vector<8x9xf32>
    %506 = vector.shape_cast %79 : vector<8x1xi1> to vector<8x1xi1>
    %507 = vector.broadcast %506 : vector<8x1xi1> to vector<8x9xi1>
    %508 = arith.select %507, %505, %504 : vector<8x9xi1>, vector<8x9xf32>
    %509 = vector.extract_strided_slice %508 {offsets = [0, 0], sizes = [8, 8], strides = [1, 1]} : vector<8x9xf32> to vector<8x8xf32>
    %510 = arith.addf %489, %509 : vector<8x8xf32>
    %cst_162 = arith.constant 0.353553385 : f32
    %511 = vector.broadcast %cst_162 : f32 to vector<8x8xf32>
    %512 = arith.mulf %510, %511 : vector<8x8xf32>
    %cst_163 = arith.constant dense<0xFF800000> : vector<8xf32>
    %513 = vector.multi_reduction <maximumf>, %512, %cst_163 [1] : vector<8x8xf32> to vector<8xf32>
    %514 = vector.shape_cast %513 : vector<8xf32> to vector<8x1xf32>
    %515 = vector.broadcast %514 : vector<8x1xf32> to vector<8x8xf32>
    %516 = arith.subf %512, %515 : vector<8x8xf32>
    %517 = math.exp %516 : vector<8x8xf32>
    %cst_164 = arith.constant dense<0.000000e+00> : vector<8xf32>
    %518 = vector.multi_reduction <add>, %517, %cst_164 [1] : vector<8x8xf32> to vector<8xf32>
    %519 = vector.shape_cast %518 : vector<8xf32> to vector<8x1xf32>
    %520 = tpu.reciprocal %519 {approx = true} : vector<8x1xf32> -> vector<8x1xf32>
    %521 = vector.broadcast %520 : vector<8x1xf32> to vector<8x8xf32>
    %522 = arith.mulf %517, %521 : vector<8x8xf32>
    %cst_165 = arith.constant dense<0.000000e+00> : vector<8x8xf32>
    %523 = tpu.matmul %522, %487, %cst_165 {dimension_numbers = #tpu.dot_dimension_numbers<[1], [0], [0], [1], [0, 0, 1, 1], [], []>} : vector<8x8xf32>, vector<8x8xf32>, vector<8x8xf32> -> vector<8x8xf32>
    %524 = vector.extract_strided_slice %3 {offsets = [24, 0], sizes = [8, 32], strides = [1, 1]} : vector<32x32xf32> to vector<8x32xf32>
    %cst_166 = arith.constant dense<0.000000e+00> : vector<8x32xf32>
    %525 = tpu.matmul %523, %524, %cst_166 {dimension_numbers = #tpu.dot_dimension_numbers<[1], [0], [0], [1], [0, 0, 1, 1], [], []>} : vector<8x8xf32>, vector<8x32xf32>, vector<8x32xf32> -> vector<8x32xf32>
    %526 = arith.addf %482, %525 : vector<8x32xf32>
    %527 = arith.addf %337, %526 : vector<8x32xf32>
    %cst_167 = arith.constant dense<0.000000e+00> : vector<8xf32>
    %528 = vector.multi_reduction <add>, %527, %cst_167 [1] : vector<8x32xf32> to vector<8xf32>
    %529 = vector.shape_cast %528 : vector<8xf32> to vector<8x1xf32>
    %cst_168 = arith.constant 3.200000e+01 : f32
    %530 = vector.broadcast %cst_168 : f32 to vector<8x1xf32>
    %531 = arith.divf %529, %530 : vector<8x1xf32>
    %532 = vector.broadcast %531 : vector<8x1xf32> to vector<8x32xf32>
    %533 = arith.subf %527, %532 : vector<8x32xf32>
    %534 = arith.mulf %533, %533 : vector<8x32xf32>
    %cst_169 = arith.constant dense<0.000000e+00> : vector<8xf32>
    %535 = vector.multi_reduction <add>, %534, %cst_169 [1] : vector<8x32xf32> to vector<8xf32>
    %536 = vector.shape_cast %535 : vector<8xf32> to vector<8x1xf32>
    %cst_170 = arith.constant 3.200000e+01 : f32
    %537 = vector.broadcast %cst_170 : f32 to vector<8x1xf32>
    %538 = arith.divf %536, %537 : vector<8x1xf32>
    %cst_171 = arith.constant 9.99999974E-6 : f32
    %539 = vector.broadcast %cst_171 : f32 to vector<8x1xf32>
    %540 = arith.addf %538, %539 : vector<8x1xf32>
    %541 = math.rsqrt %540 : vector<8x1xf32>
    %542 = vector.broadcast %541 : vector<8x1xf32> to vector<8x32xf32>
    %543 = arith.mulf %533, %542 : vector<8x32xf32>
    %544 = vector.broadcast %8 : vector<1x32xf32> to vector<8x32xf32>
    %545 = arith.mulf %543, %544 : vector<8x32xf32>
    %546 = vector.broadcast %9 : vector<1x32xf32> to vector<8x32xf32>
    %547 = arith.addf %545, %546 : vector<8x32xf32>
    %cst_172 = arith.constant dense<0.000000e+00> : vector<8x64xf32>
    %548 = tpu.matmul %547, %4, %cst_172 {dimension_numbers = #tpu.dot_dimension_numbers<[1], [0], [0], [1], [0, 0, 1, 1], [], []>} : vector<8x32xf32>, vector<32x64xf32>, vector<8x64xf32> -> vector<8x64xf32>
    %549 = vector.broadcast %5 : vector<1x64xf32> to vector<8x64xf32>
    %550 = arith.addf %548, %549 : vector<8x64xf32>
    %cst_173 = arith.constant 5.000000e-01 : f32
    %551 = vector.broadcast %cst_173 : f32 to vector<8x64xf32>
    %552 = arith.mulf %551, %550 : vector<8x64xf32>
    %cst_174 = arith.constant 4.471500e-02 : f32
    %553 = vector.broadcast %cst_174 : f32 to vector<8x64xf32>
    %554 = arith.mulf %553, %550 : vector<8x64xf32>
    %555 = arith.mulf %554, %550 : vector<8x64xf32>
    %556 = arith.mulf %555, %550 : vector<8x64xf32>
    %557 = arith.addf %550, %556 : vector<8x64xf32>
    %cst_175 = arith.constant 0.797884583 : f32
    %558 = vector.broadcast %cst_175 : f32 to vector<8x64xf32>
    %559 = arith.mulf %558, %557 : vector<8x64xf32>
    %560 = math.tanh %559 : vector<8x64xf32>
    %cst_176 = arith.constant 1.000000e+00 : f32
    %561 = vector.broadcast %cst_176 : f32 to vector<8x64xf32>
    %562 = arith.addf %561, %560 : vector<8x64xf32>
    %563 = arith.mulf %552, %562 : vector<8x64xf32>
    %cst_177 = arith.constant dense<0.000000e+00> : vector<8x32xf32>
    %564 = tpu.matmul %563, %6, %cst_177 {dimension_numbers = #tpu.dot_dimension_numbers<[1], [0], [0], [1], [0, 0, 1, 1], [], []>} : vector<8x64xf32>, vector<64x32xf32>, vector<8x32xf32> -> vector<8x32xf32>
    %565 = vector.broadcast %7 : vector<1x32xf32> to vector<8x32xf32>
    %566 = arith.addf %564, %565 : vector<8x32xf32>
    %567 = arith.addf %547, %566 : vector<8x32xf32>
    %cst_178 = arith.constant dense<0.000000e+00> : vector<8xf32>
    %568 = vector.multi_reduction <add>, %567, %cst_178 [1] : vector<8x32xf32> to vector<8xf32>
    %569 = vector.shape_cast %568 : vector<8xf32> to vector<8x1xf32>
    %cst_179 = arith.constant 3.200000e+01 : f32
    %570 = vector.broadcast %cst_179 : f32 to vector<8x1xf32>
    %571 = arith.divf %569, %570 : vector<8x1xf32>
    %572 = vector.broadcast %571 : vector<8x1xf32> to vector<8x32xf32>
    %573 = arith.subf %567, %572 : vector<8x32xf32>
    %574 = arith.mulf %573, %573 : vector<8x32xf32>
    %cst_180 = arith.constant dense<0.000000e+00> : vector<8xf32>
    %575 = vector.multi_reduction <add>, %574, %cst_180 [1] : vector<8x32xf32> to vector<8xf32>
    %576 = vector.shape_cast %575 : vector<8xf32> to vector<8x1xf32>
    %cst_181 = arith.constant 3.200000e+01 : f32
    %577 = vector.broadcast %cst_181 : f32 to vector<8x1xf32>
    %578 = arith.divf %576, %577 : vector<8x1xf32>
    %cst_182 = arith.constant 9.99999974E-6 : f32
    %579 = vector.broadcast %cst_182 : f32 to vector<8x1xf32>
    %580 = arith.addf %578, %579 : vector<8x1xf32>
    %581 = math.rsqrt %580 : vector<8x1xf32>
    %582 = vector.broadcast %581 : vector<8x1xf32> to vector<8x32xf32>
    %583 = arith.mulf %573, %582 : vector<8x32xf32>
    %584 = vector.broadcast %10 : vector<1x32xf32> to vector<8x32xf32>
    %585 = arith.mulf %583, %584 : vector<8x32xf32>
    %586 = vector.broadcast %11 : vector<1x32xf32> to vector<8x32xf32>
    %587 = arith.addf %585, %586 : vector<8x32xf32>
    %c0_183 = arith.constant 0 : index
    %c32_184 = arith.constant 32 : index
    %588 = vector.load %arg14[%c0_183, %c32_184] : memref<8x64xf32, #tpu.memory_space<vmem>>, vector<8x32xf32>
    tpu.vector_store %arg14[%c0_183, %c32_184], %587 {strides = array<i32>} : memref<8x64xf32, #tpu.memory_space<vmem>>, vector<8x32xf32>,
    return
  }
}

</mosaic_0001>

<bundles_post_ra>
// kernel: transformer_encoder_layer.1
= control target key start
LH: loop header
LB: loop body
LE: loop exit
PB: predicated region body
PF: predicated region fallthrough
CT: control target
= control target key end

     0   :  { %vm147_vm0 = vcmask 261120   ;;  %v75_v7 = vlaneseq  ;;  %v2828_v15 = vmov 0.0   ;;  %vm208_vm2 = vcmask 64512   ;;  %s2829_s28 = smov 120   ;;  %s3793_s29 = smov 32   ;;  %s3778_s2 = inlined_call_operand.vmem [shape: f32[32,128], index: 2, kind: input, shape index: {}]   ;;  %s3779_s0 = inlined_call_operand.vmem [shape: f32[8,64], index: 0, kind: input, shape index: {}]   ;;  %s3780_s1 = inlined_call_operand.vmem [shape: f32[9,64], index: 1, kind: input, shape index: {}]   ;;  %s3781_s4 = inlined_call_operand.vmem [shape: f32[1,32], index: 4, kind: input, shape index: {}]   ;;  %s3782_s3 = inlined_call_operand.vmem [shape: f32[1,32], index: 3, kind: input, shape index: {}]   ;;  %s3783_s5 = inlined_call_operand.vmem [shape: f32[32,32], index: 5, kind: input, shape index: {}]   ;;  %s3784_s10 = inlined_call_operand.vmem [shape: f32[1,32], index: 10, kind: input, shape index: {}]   ;;  %s3785_s11 = inlined_call_operand.vmem [shape: f32[1,32], index: 11, kind: input, shape index: {}]   ;;  %s3786_s6 = inlined_call_operand.vmem [shape: f32[32,64], index: 6, kind: input, shape index: {}]   ;;  %s3787_s7 = inlined_call_operand.vmem [shape: f32[1,64], index: 7, kind: input, shape index: {}]   ;;  %s3788_s8 = inlined_call_operand.vmem [shape: f32[64,32], index: 8, kind: input, shape index: {}]   ;;  %s3789_s9 = inlined_call_operand.vmem [shape: f32[1,32], index: 9, kind: input, shape index: {}]   ;;  %s3790_s12 = inlined_call_operand.vmem [shape: f32[1,32], index: 12, kind: input, shape index: {}]   ;;  %s3791_s13 = inlined_call_operand.vmem [shape: f32[1,32], index: 13, kind: input, shape index: {}]   ;;  %s3792_s14 = inlined_call_operand.vmem [shape: f32[8,64], index: 14, kind: output, shape index: {}]  }
   0x1   :  { %v2924_v0 = vld [vmem:[%s3778_s2 + $0x18] sm:$0xff]  ;;  %v2929_v1 = vld [vmem:[%s3778_s2 + $0x10] sm:$0xff]  ;;  %v2936_v2 = vld [vmem:[%s3778_s2 + $0x8] sm:$0xff]  ;;  %s2832_s30 = smov 96   ;;  %s2833_s15 = smov 64   ;;  %vm293_vm6 = vcmask 1040384  }
   0x2   :  { %163 = vmatpush.msra.mxu0 %v2924_v0  ;;  %189 = vmatpush.msra.mxu1 %v2924_v0  ;;  %v2943_v3 = vld [vmem:[%s3778_s2] sm:$0xff]  ;;  %v146_v6 = vld [vmem:[%s3780_s1 + $0x8] sm:$0x1]  ;;  %v2967_v8 = vshrl.u32 %v75_v7, 7  ;;  %v2969_v9 = vand.u32 127, %v75_v7  ;;  %s2834_s16 = smov 88  }
   0x3   :  { %v2950_v4 = vld [vmem:[%s3779_s0] sm:$0xff]  ;;  %v2835_v29 = vmov 1.0   ;;  %s2837_s19 = smov 16   ;;  %s2838_s20 = smov 80  }
   0x4   :  { %164 = vmatpush.msra.mxu0 %v2929_v1  ;;  %190 = vmatpush.msra.mxu1 %v2929_v1  ;;  %v2955_v5 = vld [vmem:[%s3780_s1] sm:$0xff]  ;;  %v2972_v10 = vadd.s32 1, %v2967_v8  ;;  %v83_v20 = vadd.s32 8, %v2967_v8  ;;  %v3028_v22 = vsub.s32 %v2967_v8, %v2969_v9  ;;  %v3106_v47 = vadd.s32 %v2969_v9, %v2967_v8  ;;  %s2839_s21 = smov 8   ;;  %s2840_s22 = smov 104  }
   0x5   :  { %v2977_v11 = vld [vmem:[%s3781_s4] ss:$0 sm:$0xff]  ;;  %s2830_s4 = smov 24   ;;  %s2841_s2 = smov 112  }
   0x6   :  { %165 = vmatpush.msra.mxu0 %v2936_v2  ;;  %191 = vmatpush.msra.mxu1 %v2936_v2  ;;  %vm80_vm1 = vcmp.eq.s32.totalorder %v2969_v9, %v2972_v10  ;;  %v3016_v18 = vld [vmem:[%s3782_s3] ss:$0 sm:$0xff]  ;;  %v85_v21 = vsub.s32 %v83_v20, %v2969_v9  ;;  %v3031_v24 = vadd.s32 1, %v3028_v22  ;;  %v110_v30 = vadd.s32 4, %v3028_v22  ;;  %s2836_s3 = smov 56   ;;  %s2842_s25 = smov 48  }
   0x7   :  { %v2990_v16 = vsel %vm80_vm1, 1.0, %v2828_v15  ;;  %v98_v31 = vadd.s32 2, %v3028_v22  ;;  %v122_v45 = vadd.s32 8, %v3028_v22  ;;  %v134_v51 = vand.u32 1, %v2972_v10  ;;  %s2843_s26 = smov 72   ;;  %s2844_s18 = smov 40  }
   0x8   :  { %166 = vmatpush.msra.mxu0 %v2943_v3  ;;  %192 = vmatpush.msra.mxu1 %v2943_v3  ;;  %v87_v23 = vadd.s32 1, %v85_v21  ;;  %v111_v25 = vadd.s32 4, %v85_v21  ;;  %v99_v26 = vadd.s32 2, %v85_v21  ;;  %vm88_vm7 = vcmp.eq.s32.totalorder %v3031_v24, 0 }
   0x9   :  { %2567 = vmatmul.msk.f32.vlgmr.msra.gmra.mxu0 %vm147_vm0, %v2950_v4  ;;  %2568 = vmatmul.msk.f32.vlgmr.msra.gmra.mxu1 %vm147_vm0, %v2955_v5  ;;  %vm112_vm14 = vcmp.eq.s32.totalorder %v110_v30, 0  ;;  %vm114_vm15 = vcmp.eq.s32.totalorder %v110_v30, 9  ;;  %vm100_vm1 = vcmp.eq.s32.totalorder %v98_v31, 0  ;;  %v123_v43 = vadd.s32 8, %v85_v21 }
   0xa   :  { %vm89_vm3 = vcmp.eq.s32.totalorder %v87_v23, 0  ;;  %vm91_vm4 = vcmp.eq.s32.totalorder %v87_v23, 9  ;;  %vm113_vm8 = vcmp.eq.s32.totalorder %v111_v25, 0  ;;  %vm115_vm9 = vcmp.eq.s32.totalorder %v111_v25, 9 }
   0xb   :  { %vm93_vm5 = vmor %vm89_vm3, %vm91_vm4  ;;  %vm101_vm10 = vcmp.eq.s32.totalorder %v99_v26, 0  ;;  %vm103_vm11 = vcmp.eq.s32.totalorder %v99_v26, 9  ;;  %vm102_vm3 = vcmp.eq.s32.totalorder %v98_v31, 9  ;;  %v136_v55 = vand.u32 2, %v2972_v10 }
   0xc   :  { %v3034_v27 = vsel %vm93_vm5, 1.0, %v2828_v15  ;;  %vm117_vm12 = vmor %vm113_vm8, %vm115_vm9  ;;  %vm125_vm8 = vcmp.eq.s32.totalorder %v123_v43, 0  ;;  %vm127_vm9 = vcmp.eq.s32.totalorder %v123_v43, 9  ;;  %v138_v60 = vand.u32 4, %v2972_v10 }
   0xd   :  { %vm105_vm13 = vmor %vm101_vm10, %vm103_vm11  ;;  %v3049_v34 = vsel %vm117_vm12, 1.0, %v2828_v15  ;;  %vm124_vm11 = vcmp.eq.s32.totalorder %v122_v45, 0  ;;  %vm126_vm12 = vcmp.eq.s32.totalorder %v122_v45, 9  ;;  %v140_v7 = vand.u32 8, %v2972_v10 }
   0xe   :  { %v3054_v35 = vsel %vm105_vm13, 1.0, %v2828_v15  ;;  %vm3058_vm4 = vmor %vm112_vm14, %vm114_vm15  ;;  %vm143_vm14 = vcmp.le.s32.totalorder %v3106_v47, 7  ;;  %vm289_vm15 = vcmask 72704  }
   0xf   :  { %vm3066_vm5 = vmor %vm100_vm1, %vm102_vm3  ;;  %vm3115_vm1 = vcmp.gt.s32.totalorder %v134_v51, 0  ;;  %vm3128_vm3 = vcmp.gt.s32.totalorder %v136_v55, 0 }
  0x10   :  { %vm129_vm10 = vmor %vm125_vm8, %vm127_vm9  ;;  %vm3142_vm8 = vcmp.gt.s32.totalorder %v138_v60, 0  ;;  %vm3156_vm9 = vcmp.gt.s32.totalorder %v140_v7, 0 }
  0x11   :  { %2569 = vmatmul.msk.f32.gmra.mxu1 %vm147_vm0, %v146_v6  ;;  %v3092_v44 = vsel %vm129_vm10, 1.0, %v2828_v15  ;;  %vm3097_vm13 = vmor %vm124_vm11, %vm126_vm12 }
  0x86   :  { %v2981_v12 = vpop.f32.mrf.mxu0  ;;  %v2983_v13 = vpop.f32.mrf.mxu1 }
  0x87   :  { %v2987_v14 = vadd.f32 %v2977_v11, %v2981_v12  ;;  %v3020_v19 = vadd.f32 %v3016_v18, %v2981_v12 }
  0x89   :  { %473 = vrot.lane.b32.xlu2 %v2987_v14, %s2829_s28  ;;  %227 = vmatpush.msrb.mxu0 %v2987_v14 }
  0x8a   :  { %2570 = vmatmul.msk.f32.vlgmr.msrb.gmra.mxu0 %vm208_vm2, %v2990_v16 }
  0x8b   :  { %2577 = vmatpush.msk.msra.mxu0 %vm293_vm6, %v3034_v27 }
  0x8d   :  { %2578 = vmatpush.msk.msra.mxu0 %vm88_vm7, %v2835_v29 }
  0x8e   :  { %v2997_v17 = vpop.f32.mrf.mxu1 }
  0x8f   :  { %477 = vrot.lane.b32.xlu1 %v2997_v17, %s2830_s4  ;;  %236 = vrot.lane.b32.xlu0 %v2997_v17, %s3793_s29 }
  0x90   :  { %2586 = vmatpush.msk.msrb.mxu0 %vm293_vm6, %v3092_v44 }
  0x92   :  { %2587 = vmatpush.msk.msrb.mxu0 %vm3097_vm13, %v2835_v29 }
  0x97   :  { %475 = vrot.lane.b32.xlu1 %v2983_v13, %s2830_s4  ;;  %234 = vrot.lane.b32.xlu0 %v2983_v13, %s3793_s29 }
  0x9f   :  { %408 = vrot.lane.b32.xlu0 %v2981_v12, %s2832_s30 }
  0xa7   :  { %447 = vrot.lane.b32.xlu0 %v2981_v12, %s2833_s15 }
  0xaf   :  { %628 = vrot.lane.b32.xlu0 %v2981_v12, %s2834_s16 }
  0xb7   :  { %626 = vrot.lane.b32.xlu0 %v3020_v19, %s2829_s28 }
  0xe3   :  { %v474_v59 = vpop.permute.xlu2 %473 }
 0x101   :  { %v237_v28 = vpop.permute.xlu0 %236  ;;  %v478_v33 = vpop.permute.xlu1 %477 }
 0x102   :  { %2571 = vmatpush.xpose.msk.msra.mxu3 %vm208_vm2, %v237_v28  ;;  %2574 = vmatpush.xpose.msk.msra.mxu2 %vm208_vm2, %v237_v28 }
 0x107   :  { %v3046_v32 = vpop.f32.mrf.mxu0 }
 0x108   :  { %505 = vrot.lane.b32.xlu2 %v3046_v32, %s2829_s28 }
 0x109   :  { %v235_v36 = vpop.permute.xlu0 %234  ;;  %v476_v40 = vpop.permute.xlu1 %475 }
 0x10a   :  { %2572 = vmatpush.xpose.msk.msra.mxu3 %vm208_vm2, %v235_v36  ;;  %2575 = vmatpush.xpose.msk.msra.mxu2 %vm208_vm2, %v235_v36 }
 0x10d   :  { %2573 = vmatmul.msk.f32.vlgmr.msra.gmra.mxu3 %vm208_vm2, %v2987_v14  ;;  %2576 = vmatmul.msk.f32.vlgmr.msra.gmra.mxu2 %vm208_vm2, %v3046_v32 }
 0x10e   :  { %2583 = vmatpush.msk.msrb.mxu2 %vm293_vm6, %v3049_v34  ;;  %2580 = vmatpush.msk.msrb.mxu3 %vm293_vm6, %v3054_v35 }
 0x110   :  { %2584 = vmatpush.msk.msrb.mxu2 %vm3058_vm4, %v2835_v29  ;;  %2581 = vmatpush.msk.msrb.mxu3 %vm3066_vm5, %v2835_v29 }
 0x111   :  { %v409_v39 = vpop.permute.xlu0 %408 }
 0x112   :  { %2592 = vmatpush.xpose.msk.msra.mxu2 %vm208_vm2, %v478_v33  ;;  %2589 = vmatpush.xpose.msk.msrb.mxu1 %vm208_vm2, %v409_v39 }
 0x115   :  { %2590 = vmatmul.msk.f32.vlgmr.msrb.gmra.mxu1 %vm208_vm2, %v3020_v19 }
 0x116   :  { %2593 = vmatpush.xpose.msk.msra.mxu2 %vm208_vm2, %v476_v40  ;;  %2598 = vmatpush.msk.msra.mxu1 %vm293_vm6, %v3034_v27 }
 0x118   :  { %2599 = vmatpush.msk.msra.mxu1 %vm88_vm7, %v2835_v29 }
 0x119   :  { %v448_v41 = vpop.permute.xlu0 %447 }
 0x11a   :  { %468 = vmatpush.msra.mxu3 %v448_v41 }
 0x121   :  { %v629_v42 = vpop.permute.xlu0 %628 }
 0x122   :  { %2610 = vmatpush.xpose.msk.msrb.mxu1 %vm208_vm2, %v629_v42 }
 0x129   :  { %v627_v10 = vpop.permute.xlu0 %626 }
 0x162   :  { %v506_v6 = vpop.permute.xlu2 %505 }
 0x190   :  { %v262_v48 = vpop.f32.mrf.mxu3  ;;  %v285_v49 = vpop.f32.mrf.mxu2 }
 0x191   :  { %v288_v50 = vsel %vm143_vm14, %v285_v49, %v262_v48 }
 0x192   :  { %2579 = vmatmul.msk.f32.vlgmr.msra.gmra.mxu0 %vm289_vm15, %v288_v50  ;;  %v432_v15 = vpop.f32.mrf.mxu1 }
 0x193   :  { %2595 = vmatpush.xpose.msk.msra.mxu0 %vm208_vm2, %v478_v33 }
 0x197   :  { %2596 = vmatpush.xpose.msk.msra.mxu0 %vm208_vm2, %v476_v40 }
 0x20f   :  { %v314_v53 = vpop.f32.mrf.mxu0 }
 0x210   :  { %v319_v54 = vsel %vm3115_vm1, %v314_v53, %v288_v50 }
 0x211   :  { %2582 = vmatmul.msk.f32.vlgmr.msrb.gmra.mxu3 %vm289_vm15, %v319_v54 }
 0x212   :  { %2601 = vmatpush.msk.msrb.mxu3 %vm293_vm6, %v3054_v35 }
 0x214   :  { %2602 = vmatpush.msk.msrb.mxu3 %vm3066_vm5, %v2835_v29 }
 0x294   :  { %v343_v57 = vpop.f32.mrf.mxu3 }
 0x295   :  { %v348_v58 = vsel %vm3128_vm3, %v343_v57, %v319_v54  ;;  %v3199_v54 = vld [vmem:[%s3783_s5] sm:$0xff] }
 0x296   :  { %2585 = vmatmul.msk.f32.vlgmr.msrb.gmra.mxu2 %vm289_vm15, %v348_v58 }
 0x297   :  { %2604 = vmatpush.msk.msrb.mxu2 %vm293_vm6, %v3049_v34 }
 0x299   :  { %2605 = vmatpush.msk.msrb.mxu2 %vm3058_vm4, %v2835_v29 }
 0x29e   :  { %2594 = vmatmul.msk.f32.vlgmr.msra.gmra.mxu2 %vm208_vm2, %v474_v59 }
 0x319   :  { %v372_v62 = vpop.f32.mrf.mxu2 }
 0x31a   :  { %v377_v63 = vsel %vm3142_vm8, %v372_v62, %v348_v58 }
 0x31b   :  { %2588 = vmatmul.msk.f32.vlgmr.msrb.gmra.mxu0 %vm289_vm15, %v377_v63 }
 0x31c   :  { %2607 = vmatpush.msk.msrb.mxu0 %vm293_vm6, %v3092_v44 }
 0x31e   :  { %2608 = vmatpush.msk.msrb.mxu0 %vm3097_vm13, %v2835_v29 }
 0x321   :  { %v502_v25 = vpop.f32.mrf.mxu2 }
 0x323   :  { %2597 = vmatmul.msk.f32.vlgmr.msra.gmra.mxu0 %vm208_vm2, %v506_v6 }
 0x324   :  { %733 = vmatpush.msra.mxu0 %v3199_v54 }
 0x398   :  { %v401_v9 = vpop.f32.mrf.mxu0 }
 0x399   :  { %v406_v20 = vsel %vm3156_vm9, %v401_v9, %v377_v63 }
 0x39a   :  { %v433_v21 = vadd.f32 %v432_v15, %v406_v20 }
 0x39c   :  { %v435_v22 = vmul.f32 0.35355338, %v433_v21 }
 0x39e   :  { %v436_v23 = vsel %vm208_vm2, %v435_v22, -inf }
 0x39f   :  { %437 = vmax.xlane.f32.xlu1 %v436_v23 }
 0x3a0   :  { %v526_v26 = vpop.f32.mrf.mxu0 }
 0x3a1   :  { %v529_v28 = vsel %vm143_vm14, %v526_v26, %v502_v25  ;;  %v3235_v25 = vld [vmem:[%s3783_s5 + $0x8] sm:$0xff] }
 0x3a2   :  { %2600 = vmatmul.msk.f32.vlgmr.msra.gmra.mxu1 %vm289_vm15, %v529_v28  ;;  %710 = vmatpush.msra.mxu2 %v3235_v25 }
 0x3aa   :  { %2611 = vmatmul.msk.f32.vlgmr.msrb.gmra.mxu1 %vm208_vm2, %v627_v10 }
 0x3b8   :  { %666 = vrot.lane.b32.xlu1 %v2981_v12, %s2836_s3 }
 0x3c0   :  { %740 = vrot.lane.b32.xlu1 %v2983_v13, %s2837_s19 }
 0x3c8   :  { %893 = vrot.lane.b32.xlu1 %v2981_v12, %s2838_s20 }
 0x3d0   :  { %985 = vrot.lane.b32.xlu1 %v2997_v17, %s2839_s21 }
 0x3d8   :  { %981 = vrot.lane.b32.xlu1 %v2987_v14, %s2840_s22 }
 0x412   :  { %v438_v30 = vpop.xlane.xlu1 %437 }
 0x413   :  { %v439_v31 = vsub.f32 %v435_v22, %v438_v30 }
 0x415   :  { %v440_v33 = vmul.f32 1.442695, %v439_v31 }
 0x417   :  { %2781 = vpow2.f32 %v440_v33 }
 0x41d   :  { %v2782_v36 = vpop.eup %2781 }
 0x41e   :  { %v442_v39 = vsel %vm208_vm2, %v2782_v36, 0.0 }
 0x41f   :  { %443 = vadd.xlane.f32.xlu2 %v442_v39  ;;  %v550_v49 = vpop.f32.mrf.mxu1 }
 0x427   :  { %v651_v59 = vpop.f32.mrf.mxu1 }
 0x42a   :  { %v667_v41 = vpop.permute.xlu1 %666 }
 0x432   :  { %v741_v48 = vpop.permute.xlu1 %740 }
 0x437   :  { %742 = vrot.lane.b32.xlu2 %v2997_v17, %s2837_s19  ;;  %v553_v17 = vsel %vm3115_vm1, %v550_v49, %v529_v28 }
 0x43a   :  { %v894_v26 = vpop.permute.xlu1 %893 }
 0x442   :  { %v986_v30 = vpop.permute.xlu1 %985 }
 0x492   :  { %v444_v40 = vpop.xlane.xlu2 %443 }
 0x493   :  { %2783 = vrcp.f32 %v444_v40 }
 0x499   :  { %v2784_v42 = vpop.eup %2783 }
 0x49a   :  { %v446_v43 = vmul.f32 %v2784_v42, %v2782_v36  ;;  %v743_v45 = vpop.permute.xlu2 %742 }
 0x49b   :  { %2615 = vmatpush.xpose.msk.msra.mxu1 %vm208_vm2, %v743_v45 }
 0x49c   :  { %2591 = vmatmul.msk.f32.vlgmr.msra.gmra.mxu3 %vm208_vm2, %v446_v43 }
 0x49d   :  { %687 = vmatpush.msra.mxu3 %v667_v41 }
 0x49f   :  { %2616 = vmatpush.xpose.msk.msra.mxu1 %vm208_vm2, %v741_v48 }
 0x4a3   :  { %2627 = vmatpush.msk.msrb.mxu1 %vm293_vm6, %v3049_v34 }
 0x4a4   :  { %2603 = vmatmul.msk.f32.vlgmr.msrb.gmra.mxu3 %vm289_vm15, %v553_v17 }
 0x4a5   :  { %2628 = vmatpush.msk.msrb.mxu1 %vm3058_vm4, %v2835_v29  ;;  %2618 = vmatpush.xpose.msk.msrb.mxu3 %vm208_vm2, %v743_v45 }
 0x4a9   :  { %2619 = vmatpush.xpose.msk.msrb.mxu3 %vm208_vm2, %v741_v48 }
 0x51f   :  { %v470_v50 = vpop.f32.mrf.mxu3 }
 0x527   :  { %v574_v51 = vpop.f32.mrf.mxu3 }
 0x528   :  { %v577_v53 = vsel %vm3128_vm3, %v574_v51, %v553_v17  ;;  %v982_v51 = vpop.permute.xlu1 %981 }
 0x529   :  { %2606 = vmatmul.msk.f32.vlgmr.msrb.gmra.mxu2 %vm289_vm15, %v577_v53 }
 0x52a   :  { %2621 = vmatpush.msk.msrb.mxu2 %vm293_vm6, %v3034_v27 }
 0x52c   :  { %2622 = vmatpush.msk.msrb.mxu2 %vm88_vm7, %v2835_v29 }
 0x5ac   :  { %v598_v55 = vpop.f32.mrf.mxu2 }
 0x5ad   :  { %v601_v57 = vsel %vm3142_vm8, %v598_v55, %v577_v53 }
 0x5ae   :  { %2609 = vmatmul.msk.f32.vlgmr.msrb.gmra.mxu0 %vm289_vm15, %v601_v57 }
 0x5af   :  { %2624 = vmatpush.msk.msrb.mxu0 %vm293_vm6, %v3054_v35 }
 0x5b1   :  { %2625 = vmatpush.msk.msrb.mxu0 %vm3066_vm5, %v2835_v29 }
 0x5b6   :  { %2614 = vmatmul.msk.f32.vlgmr.msra.gmra.mxu0 %vm208_vm2, %v470_v50 }
 0x62b   :  { %v622_v58 = vpop.f32.mrf.mxu0 }
 0x62c   :  { %v625_v60 = vsel %vm3156_vm9, %v622_v58, %v601_v57 }
 0x62d   :  { %v652_v62 = vadd.f32 %v651_v59, %v625_v60 }
 0x62f   :  { %v654_v63 = vmul.f32 0.35355338, %v652_v62 }
 0x631   :  { %v655_v6 = vsel %vm208_vm2, %v654_v63, -inf }
 0x632   :  { %656 = vmax.xlane.f32.xlu0 %v655_v6 }
 0x633   :  { %v735_v45 = vpop.f32.mrf.mxu0 }
 0x646   :  { %738 = vrot.lane.b32.xlu0 %v2987_v14, %s2841_s2 }
 0x64e   :  { %1013 = vrot.lane.b32.xlu0 %v3046_v32, %s2840_s22 }
 0x656   :  { %931 = vrot.lane.b32.xlu0 %v2981_v12, %s2842_s25 }
 0x65e   :  { %1136 = vrot.lane.b32.xlu0 %v2981_v12, %s2843_s26 }
 0x666   :  { %1134 = vrot.lane.b32.xlu0 %v3020_v19, %s2840_s22 }
 0x6a5   :  { %v657_v7 = vpop.xlane.xlu0 %656 }
 0x6a6   :  { %v658_v9 = vsub.f32 %v654_v63, %v657_v7 }
 0x6a8   :  { %v659_v15 = vmul.f32 1.442695, %v658_v9 }
 0x6aa   :  { %2785 = vpow2.f32 %v659_v15  ;;  %v3295_v15 = vld [vmem:[%s3783_s5 + $0x10] sm:$0xff] }
 0x6b0   :  { %v2786_v20 = vpop.eup %2785 }
 0x6b1   :  { %v661_v14 = vsel %vm208_vm2, %v2786_v20, 0.0 }
 0x6b2   :  { %662 = vadd.xlane.f32.xlu2 %v661_v14 }
 0x6b8   :  { %v739_v21 = vpop.permute.xlu0 %738 }
 0x6b9   :  { %2617 = vmatmul.msk.f32.vlgmr.msra.gmra.mxu1 %vm208_vm2, %v739_v21 }
 0x6ba   :  { %975 = vmatpush.msra.mxu1 %v3295_v15 }
 0x6c0   :  { %v1014_v22 = vpop.permute.xlu0 %1013 }
 0x6c8   :  { %v932_v23 = vpop.permute.xlu0 %931 }
 0x6c9   :  { %952 = vmatpush.msra.mxu0 %v932_v23 }
 0x6ca   :  { %770 = vrot.lane.b32.xlu2 %v3046_v32, %s2841_s2 }
 0x6d2   :  { %891 = vrot.lane.b32.xlu2 %v3020_v19, %s2841_s2 }
 0x6da   :  { %983 = vrot.lane.b32.xlu2 %v2983_v13, %s2839_s21 }
 0x725   :  { %v663_v32 = vpop.xlane.xlu2 %662 }
 0x726   :  { %2787 = vrcp.f32 %v663_v32 }
 0x72c   :  { %v2788_v19 = vpop.eup %2787 }
 0x72d   :  { %v665_v28 = vmul.f32 %v2788_v19, %v2786_v20  ;;  %v771_v13 = vpop.permute.xlu2 %770 }
 0x72f   :  { %2612 = vmatmul.msk.f32.vlgmr.msra.gmra.mxu3 %vm208_vm2, %v665_v28 }
 0x730   :  { %2630 = vmatpush.msk.msra.mxu3 %vm293_vm6, %v3092_v44 }
 0x732   :  { %2631 = vmatpush.msk.msra.mxu3 %vm3097_vm13, %v2835_v29 }
 0x735   :  { %v892_v10 = vpop.permute.xlu2 %891 }
 0x736   :  { %v767_v36 = vpop.f32.mrf.mxu1 }
 0x737   :  { %2620 = vmatmul.msk.f32.vlgmr.msrb.gmra.mxu3 %vm208_vm2, %v771_v13 }
 0x738   :  { %2637 = vmatpush.xpose.msk.msrb.mxu3 %vm208_vm2, %v986_v30 }
 0x73d   :  { %v984_v31 = vpop.permute.xlu2 %983 }
 0x73e   :  { %2638 = vmatpush.xpose.msk.msrb.mxu3 %vm208_vm2, %v984_v31 }
 0x7b2   :  { %v689_v33 = vpop.f32.mrf.mxu3 }
 0x7b3   :  { %2613 = vmatmul.msk.f32.vlgmr.msra.gmra.mxu2 %vm208_vm2, %v689_v33 }
 0x7b4   :  { %2633 = vmatpush.xpose.msk.msra.mxu2 %vm208_vm2, %v894_v26 }
 0x7ba   :  { %v791_v39 = vpop.f32.mrf.mxu3 }
 0x7bb   :  { %v794_v40 = vsel %vm143_vm14, %v791_v39, %v767_v36 }
 0x7bc   :  { %2623 = vmatmul.msk.f32.vlgmr.msrb.gmra.mxu2 %vm289_vm15, %v794_v40 }
 0x7bd   :  { %2640 = vmatpush.xpose.msk.msrb.mxu2 %vm208_vm2, %v986_v30 }
 0x7c1   :  { %2641 = vmatpush.xpose.msk.msrb.mxu2 %vm208_vm2, %v984_v31 }
 0x7c4   :  { %2634 = vmatmul.msk.f32.vlgmr.msra.gmra.mxu2 %vm208_vm2, %v892_v10 }
 0x7c5   :  { %2652 = vmatpush.msk.msra.mxu2 %vm293_vm6, %v3092_v44 }
 0x7c7   :  { %2653 = vmatpush.msk.msra.mxu2 %vm3097_vm13, %v2835_v29 }
 0x7cc   :  { %2642 = vmatmul.msk.f32.vlgmr.msrb.gmra.mxu2 %vm208_vm2, %v1014_v22  ;;  %v1137_v22 = vpop.permute.xlu0 %1136 }
 0x7d4   :  { %v1135_v19 = vpop.permute.xlu0 %1134 }
 0x836   :  { %v712_v41 = vpop.f32.mrf.mxu2 }
 0x837   :  { %v736_v30 = vadd.f32 %v735_v45, %v712_v41 }
 0x83f   :  { %v815_v42 = vpop.f32.mrf.mxu2 }
 0x840   :  { %v818_v43 = vsel %vm3115_vm1, %v815_v42, %v794_v40 }
 0x841   :  { %2626 = vmatmul.msk.f32.vlgmr.msrb.gmra.mxu0 %vm289_vm15, %v818_v43 }
 0x842   :  { %2643 = vmatpush.msk.msrb.mxu0 %vm293_vm6, %v3034_v27 }
 0x844   :  { %2644 = vmatpush.msk.msrb.mxu0 %vm88_vm7, %v2835_v29 }
 0x847   :  { %v916_v55 = vpop.f32.mrf.mxu2 }
 0x84f   :  { %v1034_v23 = vpop.f32.mrf.mxu2 }
 0x8be   :  { %v839_v48 = vpop.f32.mrf.mxu0 }
 0x8bf   :  { %v842_v49 = vsel %vm3128_vm3, %v839_v48, %v818_v43 }
 0x8c0   :  { %2629 = vmatmul.msk.f32.vlgmr.msrb.gmra.mxu1 %vm289_vm15, %v842_v49 }
 0x8c1   :  { %2646 = vmatpush.msk.msrb.mxu1 %vm293_vm6, %v3054_v35 }
 0x8c3   :  { %2647 = vmatpush.msk.msrb.mxu1 %vm3066_vm5, %v2835_v29 }
 0x93d   :  { %v863_v17 = vpop.f32.mrf.mxu1 }
 0x93e   :  { %v866_v50 = vsel %vm3142_vm8, %v863_v17, %v842_v49 }
 0x93f   :  { %2632 = vmatmul.msk.f32.vlgmr.msra.gmra.mxu3 %vm289_vm15, %v866_v50 }
 0x940   :  { %2649 = vmatpush.msk.msra.mxu3 %vm293_vm6, %v3049_v34 }
 0x942   :  { %2650 = vmatpush.msk.msra.mxu3 %vm3058_vm4, %v2835_v29 }
 0x947   :  { %2639 = vmatmul.msk.f32.vlgmr.msrb.gmra.mxu3 %vm208_vm2, %v982_v51 }
 0x9c2   :  { %v887_v53 = vpop.f32.mrf.mxu3 }
 0x9c3   :  { %v890_v57 = vsel %vm3156_vm9, %v887_v53, %v866_v50 }
 0x9c4   :  { %v917_v58 = vadd.f32 %v916_v55, %v890_v57 }
 0x9c6   :  { %v919_v59 = vmul.f32 0.35355338, %v917_v58  ;;  %v3334_v58 = vld [vmem:[%s3783_s5 + $0x18] sm:$0xff] }
 0x9c7   :  { %1218 = vmatpush.msrb.mxu3 %v3334_v58 }
 0x9c8   :  { %v920_v60 = vsel %vm208_vm2, %v919_v59, -inf }
 0x9c9   :  { %921 = vmax.xlane.f32.xlu2 %v920_v60 }
 0xa3c   :  { %v922_v62 = vpop.xlane.xlu2 %921 }
 0xa3d   :  { %v923_v63 = vsub.f32 %v919_v59, %v922_v62  ;;  %v1358_v62 = vld [vmem:[%s3780_s1 + $0x8] sm:$0x1] }
 0xa3f   :  { %v924_v6 = vmul.f32 1.442695, %v923_v63 }
 0xa41   :  { %2789 = vpow2.f32 %v924_v6 }
 0xa47   :  { %v2790_v7 = vpop.eup %2789 }
 0xa48   :  { %v926_v9 = vsel %vm208_vm2, %v2790_v7, 0.0 }
 0xa49   :  { %927 = vadd.xlane.f32.xlu1 %v926_v9 }
 0xa62   :  { %1174 = vrot.lane.b32.xlu1 %v2981_v12, %s2844_s18  ;;  %v1010_v12 = vpop.f32.mrf.mxu3 }
 0xa63   :  { %v1037_v32 = vsel %vm143_vm14, %v1034_v23, %v1010_v12 }
 0xabc   :  { %v928_v20 = vpop.xlane.xlu1 %927 }
 0xabd   :  { %2791 = vrcp.f32 %v928_v20  ;;  %v2845_v20 = vmov 32.0  }
 0xac3   :  { %v2792_v14 = vpop.eup %2791 }
 0xac4   :  { %v930_v21 = vmul.f32 %v2792_v14, %v2790_v7 }
 0xac6   :  { %2635 = vmatmul.msk.f32.vlgmr.msra.gmra.mxu0 %vm208_vm2, %v930_v21 }
 0xac7   :  { %2655 = vmatpush.xpose.msk.msra.mxu0 %vm208_vm2, %v1137_v22 }
 0xace   :  { %2645 = vmatmul.msk.f32.vlgmr.msrb.gmra.mxu0 %vm289_vm15, %v1037_v32 }
 0xad4   :  { %v1175_v28 = vpop.permute.xlu1 %1174 }
 0xad6   :  { %2656 = vmatmul.msk.f32.vlgmr.msra.gmra.mxu0 %vm208_vm2, %v1135_v19 }
 0xb43   :  { %v954_v26 = vpop.f32.mrf.mxu0 }
 0xb44   :  { %2636 = vmatmul.msk.f32.vlgmr.msra.gmra.mxu1 %vm208_vm2, %v954_v26 }
 0xb45   :  { %1195 = vmatpush.msra.mxu1 %v1175_v28 }
 0xb4b   :  { %v1058_v13 = vpop.f32.mrf.mxu0 }
 0xb4c   :  { %v1061_v10 = vsel %vm3115_vm1, %v1058_v13, %v1037_v32 }
 0xb4d   :  { %2648 = vmatmul.msk.f32.vlgmr.msrb.gmra.mxu1 %vm289_vm15, %v1061_v10 }
 0xb4e   :  { %1376 = vmatpush.msrb.mxu1 %v2924_v0 }
 0xb50   :  { %1377 = vmatpush.msrb.mxu1 %v2929_v1 }
 0xb52   :  { %1378 = vmatpush.msrb.mxu1 %v2936_v2 }
 0xb53   :  { %v1159_v48 = vpop.f32.mrf.mxu0 }
 0xb54   :  { %1379 = vmatpush.msrb.mxu1 %v2943_v3 }
 0xbc1   :  { %v977_v31 = vpop.f32.mrf.mxu1 }
 0xbc2   :  { %v980_v33 = vadd.f32 %v977_v31, %v736_v30 }
 0xbca   :  { %v1082_v36 = vpop.f32.mrf.mxu1 }
 0xbcb   :  { %v1085_v39 = vsel %vm3128_vm3, %v1082_v36, %v1061_v10 }
 0xbcc   :  { %2651 = vmatmul.msk.f32.vlgmr.msra.gmra.mxu3 %vm289_vm15, %v1085_v39 }
 0xbcd   :  { %1406 = vmatpush.msra.mxu3 %v2924_v0 }
 0xbcf   :  { %1407 = vmatpush.msra.mxu3 %v2929_v1 }
 0xbd1   :  { %1408 = vmatpush.msra.mxu3 %v2936_v2 }
 0xbd3   :  { %1409 = vmatpush.msra.mxu3 %v2943_v3 }
 0xc4f   :  { %v1106_v40 = vpop.f32.mrf.mxu3 }
 0xc50   :  { %v1109_v42 = vsel %vm3142_vm8, %v1106_v40, %v1085_v39  ;;  %v3385_v39 = vld [vmem:[%s3786_s6 + $0x18] sm:$0xff]  ;;  %v3391_v40 = vld [vmem:[%s3786_s6 + $0x10] sm:$0xff] }
 0xc51   :  { %2654 = vmatmul.msk.f32.vlgmr.msra.gmra.mxu2 %vm289_vm15, %v1109_v42 }
 0xc52   :  { %1280 = vmatpush.msrb.mxu2 %v3385_v39 }
 0xc54   :  { %1281 = vmatpush.msrb.mxu2 %v3391_v40 }
 0xcd4   :  { %v1130_v43 = vpop.f32.mrf.mxu2 }
 0xcd5   :  { %v1133_v49 = vsel %vm3156_vm9, %v1130_v43, %v1109_v42  ;;  %v3402_v42 = vld [vmem:[%s3786_s6] sm:$0xff] }
 0xcd6   :  { %v1160_v41 = vadd.f32 %v1159_v48, %v1133_v49 }
 0xcd8   :  { %v1162_v45 = vmul.f32 0.35355338, %v1160_v41 }
 0xcda   :  { %v1163_v17 = vsel %vm208_vm2, %v1162_v45, -inf }
 0xcdb   :  { %1164 = vmax.xlane.f32.xlu0 %v1163_v17 }
 0xcef   :  { %1386 = vrot.lane.b32.xlu0 %v2955_v5, %s2832_s30 }
 0xd4e   :  { %v1165_v50 = vpop.xlane.xlu0 %1164 }
 0xd4f   :  { %v1166_v51 = vsub.f32 %v1162_v45, %v1165_v50 }
 0xd51   :  { %v1167_v53 = vmul.f32 1.442695, %v1166_v51 }
 0xd53   :  { %2793 = vpow2.f32 %v1167_v53 }
 0xd59   :  { %v2794_v55 = vpop.eup %2793 }
 0xd5a   :  { %v1169_v57 = vsel %vm208_vm2, %v2794_v55, 0.0 }
 0xd5b   :  { %1170 = vadd.xlane.f32.xlu2 %v1169_v57 }
 0xd61   :  { %v1387_v1 = vpop.permute.xlu0 %1386 }
 0xd73   :  { %1360 = vrot.lane.b32.xlu2 %v2950_v4, %s2832_s30 }
 0xd7b   :  { %1388 = vrot.lane.b32.xlu2 %v1358_v62, %s2832_s30  ;;  %v3427_v62 = vld [vmem:[%s3785_s11] ss:$0 sm:$0xff] }
 0xdce   :  { %v1171_v5 = vpop.xlane.xlu2 %1170 }
 0xdcf   :  { %2795 = vrcp.f32 %v1171_v5  ;;  %v3422_v5 = vld [vmem:[%s3784_s10] ss:$0 sm:$0xff] }
 0xdd0   :  { %2797 = vrcp.f32 %v2845_v20  ;;  %v3484_v20 = vld [vmem:[%s3788_s8 + $0x8] sm:$0xff] }
 0xdd5   :  { %v2796_v59 = vpop.eup %2795 }
 0xdd6   :  { %v1173_v60 = vmul.f32 %v2796_v59, %v2794_v55  ;;  %v1361_v0 = vpop.permute.xlu2 %1360  ;;  %v2798_v14 = vpop.eup %2797 }
 0xdd7   :  { %v1229_v21 = vmul.f32 32.0, %v2798_v14  ;;  %vm1233_vm10 = vweird.f32 %v2798_v14 }
 0xdd8   :  { %2657 = vmatmul.msk.f32.vlgmr.msra.gmra.mxu1 %vm208_vm2, %v1173_v60 }
 0xdd9   :  { %v1230_v12 = vsub.f32 1.0, %v1229_v21  ;;  %v3501_v21 = vld [vmem:[%s3787_s7] ss:$0 sm:$0xff]  ;;  %s3809_s7 = smov 32  }
 0xddb   :  { %v1231_v23 = vmul.f32 %v2798_v14, %v1230_v12 }
 0xddd   :  { %v1232_v19 = vadd.f32 %v2798_v14, %v1231_v23 }
 0xdde   :  { %v1389_v2 = vpop.permute.xlu2 %1388 }
 0xde0   :  { %2661 = vmatmul.msk.f32.vlgmr.msrb.gmra.mxu1 %vm147_vm0, %v1361_v0 }
 0xe55   :  { %v1197_v63 = vpop.f32.mrf.mxu1 }
 0xe56   :  { %2658 = vmatmul.msk.f32.vlgmr.msrb.gmra.mxu3 %vm208_vm2, %v1197_v63 }
 0xe57   :  { %2677 = vmatpush.msk.msrb.mxu3 %vm293_vm6, %v3049_v34 }
 0xe59   :  { %2678 = vmatpush.msk.msrb.mxu3 %vm3058_vm4, %v2835_v29 }
 0xe5d   :  { %v3373_v31 = vpop.f32.mrf.mxu1 }
 0xe5e   :  { %2662 = vmatmul.msk.f32.vlgmr.msra.gmra.mxu3 %vm147_vm0, %v1387_v1  ;;  %v3377_v36 = vadd.f32 %v2977_v11, %v3373_v31  ;;  %v3397_v11 = vld [vmem:[%s3786_s6 + $0x8] sm:$0xff] }
 0xe5f   :  { %1282 = vmatpush.msrb.mxu2 %v3397_v11 }
 0xe61   :  { %1283 = vmatpush.msrb.mxu2 %v3402_v42 }
 0xe63   :  { %1434 = vmatpush.msra.mxu2 %v3377_v36 }
 0xe66   :  { %2663 = vmatmul.msk.f32.gmra.mxu3 %vm147_vm0, %v1389_v2  ;;  %v3448_v2 = vld [vmem:[%s3788_s8 + $0x38] sm:$0xff] }
 0xe67   :  { %1312 = vmatpush.msrb.mxu0 %v3448_v2 }
 0xed9   :  { %v1220_v3 = vpop.f32.mrf.mxu3 }
 0xeda   :  { %v1223_v6 = vadd.f32 %v1220_v3, %v980_v33  ;;  %v3460_v3 = vld [vmem:[%s3788_s8 + $0x28] sm:$0xff] }
 0xedc   :  { %v1224_v7 = vadd.f32 %v1223_v6, %v2950_v4  ;;  %v3365_v4 = vsel %vm1233_vm10, %v2798_v14, %v1232_v19  ;;  %v3466_v6 = vld [vmem:[%s3788_s8 + $0x20] sm:$0xff] }
 0xedd   :  { %v3489_v14 = vld [vmem:[%s3788_s8] sm:$0xff] }
 0xede   :  { %v1225_v9 = vsel %vm147_vm0, %v1224_v7, 0.0 }
 0xedf   :  { %1226 = vadd.xlane.f32.xlu1 %v1225_v9  ;;  %v3477_v9 = vld [vmem:[%s3788_s8 + $0x10] sm:$0xff] }
 0xee1   :  { %v3357_v22 = vpop.f32.mrf.mxu3 }
 0xee9   :  { %v3361_v32 = vpop.f32.mrf.mxu3 }
 0xeea   :  { %1443 = vrot.lane.b32.xlu0 %v3361_v32, %s3793_s29 }
 0xef2   :  { %1441 = vrot.lane.b32.xlu0 %v3357_v22, %s3793_s29 }
 0xef8   :  { %1660 = vrot.lane.b32.xlu1 %v3357_v22, %s2830_s4 }
 0xefa   :  { %1662 = vrot.lane.b32.xlu0 %v3361_v32, %s2830_s4 }
 0xf02   :  { %1658 = vrot.lane.b32.xlu0 %v3377_v36, %s2829_s28 }
 0xf0a   :  { %1593 = vrot.lane.b32.xlu0 %v3373_v31, %s2832_s30 }
 0xf52   :  { %v1227_v26 = vpop.xlane.xlu1 %1226 }
 0xf53   :  { %v1235_v28 = vmul.f32 %v3365_v4, %v1227_v26 }
 0xf55   :  { %v1236_v13 = vsub.f32 %v1224_v7, %v1235_v28  ;;  %v3472_v7 = vld [vmem:[%s3788_s8 + $0x18] sm:$0xff] }
 0xf57   :  { %v1237_v10 = vmul.f32 %v1236_v13, %v1236_v13 }
 0xf59   :  { %v1238_v30 = vsel %vm147_vm0, %v1237_v10, 0.0 }
 0xf5a   :  { %1239 = vadd.xlane.f32.xlu2 %v1238_v30 }
 0xf5c   :  { %v1444_v33 = vpop.permute.xlu0 %1443 }
 0xf5d   :  { %2665 = vmatpush.xpose.msk.msra.mxu1 %vm208_vm2, %v1444_v33 }
 0xf64   :  { %v1442_v43 = vpop.permute.xlu0 %1441 }
 0xf65   :  { %2666 = vmatpush.xpose.msk.msra.mxu1 %vm208_vm2, %v1442_v43 }
 0xf68   :  { %2667 = vmatmul.msk.f32.vlgmr.msra.gmra.mxu1 %vm208_vm2, %v3377_v36 }
 0xf69   :  { %2674 = vmatpush.msk.msrb.mxu1 %vm293_vm6, %v3054_v35 }
 0xf6a   :  { %v1661_v1 = vpop.permute.xlu1 %1660 }
 0xf6b   :  { %2675 = vmatpush.msk.msrb.mxu1 %vm3066_vm5, %v2835_v29 }
 0xf6c   :  { %v1663_v45 = vpop.permute.xlu0 %1662 }
 0xf6d   :  { %2686 = vmatpush.xpose.msk.msra.mxu3 %vm208_vm2, %v1663_v45 }
 0xf71   :  { %2687 = vmatpush.xpose.msk.msra.mxu3 %vm208_vm2, %v1661_v1 }
 0xfcd   :  { %v1240_v48 = vpop.xlane.xlu2 %1239 }
 0xfce   :  { %v1241_v49 = vmul.f32 %v1240_v48, %v3365_v4 }
 0xfd0   :  { %v1242_v41 = vadd.f32 1e-05, %v1241_v49 }
 0xfd2   :  { %2799 = vrsqrt.f32 %v1242_v41  ;;  %vm1249_vm12 = vweird.f32 %v1242_v41 }
 0xfd8   :  { %v2800_v17 = vpop.eup %2799 }
 0xfd9   :  { %v1244_v50 = vmul.f32 %v2800_v17, %v1242_v41  ;;  %vm1250_vm11 = vweird.f32 %v2800_v17 }
 0xfda   :  { %vm1251_vm10 = vmor %vm1249_vm12, %vm1250_vm11  ;;  %vm1300_vm11 = vcmask 523264  }
 0xfdb   :  { %v1245_v51 = vmul.f32 %v2800_v17, %v1244_v50 }
 0xfdd   :  { %v1246_v53 = vmul.f32 0.5, %v1245_v51 }
 0xfdf   :  { %v1247_v55 = vsub.f32 1.5, %v1246_v53 }
 0xfe1   :  { %v1248_v57 = vmul.f32 %v2800_v17, %v1247_v55 }
 0xfe3   :  { %v1252_v59 = vsel %vm1251_vm10, %v2800_v17, %v1248_v57 }
 0xfe4   :  { %v1253_v60 = vmul.f32 %v1252_v59, %v1236_v13 }
 0xfe5   :  { %v1469_v53 = vpop.f32.mrf.mxu1 }
 0xfe6   :  { %v1257_v63 = vmul.f32 %v3422_v5, %v1253_v60 }
 0xfe8   :  { %v3431_v0 = vadd.f32 %v3427_v62, %v1257_v63 }
 0xfea   :  { %2659 = vmatmul.msk.f32.vlgmr.msrb.gmra.mxu2 %vm147_vm0, %v3431_v0 }
 0xfeb   :  { %2668 = vmatpush.xpose.msk.msrb.mxu2 %vm208_vm2, %v1444_v33  ;;  %v1659_v33 = vpop.permute.xlu0 %1658 }
 0xfef   :  { %2669 = vmatpush.xpose.msk.msrb.mxu2 %vm208_vm2, %v1442_v43 }
 0xff2   :  { %2664 = vmatmul.msk.f32.vlgmr.msra.gmra.mxu2 %vm208_vm2, %v2990_v16  ;;  %v3454_v16 = vld [vmem:[%s3788_s8 + $0x30] sm:$0xff] }
 0xff3   :  { %2680 = vmatpush.msk.msra.mxu2 %vm293_vm6, %v3092_v44  ;;  %1313 = vmatpush.msrb.mxu0 %v3454_v16  ;;  %v1594_v17 = vpop.permute.xlu0 %1593 }
 0xff5   :  { %2681 = vmatpush.msk.msra.mxu2 %vm3097_vm13, %v2835_v29  ;;  %1314 = vmatpush.msrb.mxu0 %v3460_v3 }
 0xff7   :  { %1315 = vmatpush.msrb.mxu0 %v3466_v6 }
 0xff9   :  { %1316 = vmatpush.msrb.mxu0 %v3472_v7 }
 0xffb   :  { %1317 = vmatpush.msrb.mxu0 %v3477_v9 }
 0xffd   :  { %1318 = vmatpush.msrb.mxu0 %v3484_v20 }
 0xfff   :  { %1319 = vmatpush.msrb.mxu0 %v3489_v14 }
0x1001   :  { %2671 = vmatpush.msk.msra.mxu0 %vm293_vm6, %v3034_v27 }
0x1003   :  { %2672 = vmatpush.msk.msra.mxu0 %vm88_vm7, %v2835_v29 }
0x106d   :  { %v1285_v12 = vpop.f32.mrf.mxu2 }
0x106e   :  { %v1286_v23 = vadd.f32 %v3501_v21, %v1285_v12 }
0x1070   :  { %v1289_v19 = vmul.f32 0.044715, %v1286_v23  ;;  %v1288_v48 = vmul.f32 0.5, %v1286_v23 }
0x1072   :  { %v1290_v26 = vmul.f32 %v1289_v19, %v1286_v23 }
0x1074   :  { %v1291_v28 = vmul.f32 %v1290_v26, %v1286_v23 }
0x1075   :  { %v3504_v13 = vpop.f32.mrf.mxu2 }
0x1076   :  { %v1292_v10 = vadd.f32 %v1291_v28, %v1286_v23  ;;  %1690 = vrot.lane.b32.xlu2 %v3504_v13, %s2829_s28  ;;  %2670 = vmatmul.msk.f32.vlgmr.msrb.gmra.mxu2 %vm208_vm2, %v3504_v13 }
0x1077   :  { %2689 = vmatpush.xpose.msk.msrb.mxu2 %vm208_vm2, %v1663_v45  ;;  %v3520_v45 = vadd.f32 %v3016_v18, %v3373_v31 }
0x1078   :  { %v1293_v30 = vmul.f32 0.7978846, %v1292_v10 }
0x107a   :  { %2801 = vtanh.f32 %v1293_v30 }
0x107b   :  { %2690 = vmatpush.xpose.msk.msrb.mxu2 %vm208_vm2, %v1661_v1 }
0x107e   :  { %1632 = vrot.lane.b32.xlu2 %v3373_v31, %s2833_s15 }
0x1080   :  { %v2802_v43 = vpop.eup %2801 }
0x1081   :  { %v1295_v49 = vadd.f32 1.0, %v2802_v43 }
0x1083   :  { %v1296_v41 = vmul.f32 %v1295_v49, %v1288_v48 }
0x1085   :  { %2660 = vmatmul.msk.f32.vlgmr.msrb.gmra.mxu0 %vm1300_vm11, %v1296_v41 }
0x1086   :  { %2683 = vmatpush.xpose.msk.msrb.mxu0 %vm208_vm2, %v1594_v17  ;;  %1813 = vrot.lane.b32.xlu2 %v3373_v31, %s2834_s16 }
0x108e   :  { %1811 = vrot.lane.b32.xlu2 %v3520_v45, %s2829_s28 }
0x10d0   :  { %v1691_v50 = vpop.permute.xlu2 %1690 }
0x10d8   :  { %v1633_v51 = vpop.permute.xlu2 %1632 }
0x10d9   :  { %1653 = vmatpush.msra.mxu1 %v1633_v51 }
0x10e0   :  { %v1814_v18 = vpop.permute.xlu2 %1813 }
0x10e8   :  { %v1812_v41 = vpop.permute.xlu2 %1811 }
0x10f9   :  { %v1492_v55 = vpop.f32.mrf.mxu2 }
0x10fa   :  { %v1495_v57 = vsel %vm143_vm14, %v1492_v55, %v1469_v53 }
0x10fb   :  { %2673 = vmatmul.msk.f32.vlgmr.msra.gmra.mxu0 %vm289_vm15, %v1495_v57 }
0x10fc   :  { %2692 = vmatpush.msk.msra.mxu0 %vm293_vm6, %v3034_v27 }
0x10fe   :  { %2693 = vmatpush.msk.msra.mxu0 %vm88_vm7, %v2835_v29 }
0x1102   :  { %v3535_v59 = vpop.f32.mrf.mxu0 }
0x1103   :  { %2684 = vmatmul.msk.f32.vlgmr.msrb.gmra.mxu0 %vm208_vm2, %v3520_v45 }
0x1104   :  { %2704 = vmatpush.xpose.msk.msrb.mxu0 %vm208_vm2, %v1814_v18 }
0x1178   :  { %v1516_v60 = vpop.f32.mrf.mxu0 }
0x1179   :  { %v1519_v63 = vsel %vm3115_vm1, %v1516_v60, %v1495_v57 }
0x117a   :  { %2676 = vmatmul.msk.f32.vlgmr.msrb.gmra.mxu1 %vm289_vm15, %v1519_v63 }
0x117b   :  { %2695 = vmatpush.msk.msrb.mxu1 %vm293_vm6, %v3054_v35 }
0x117d   :  { %2696 = vmatpush.msk.msrb.mxu1 %vm3066_vm5, %v2835_v29 }
0x1180   :  { %v1617_v28 = vpop.f32.mrf.mxu0 }
0x11f7   :  { %v1540_v1 = vpop.f32.mrf.mxu1 }
0x11f8   :  { %v1543_v12 = vsel %vm3128_vm3, %v1540_v1, %v1519_v63 }
0x11f9   :  { %2679 = vmatmul.msk.f32.vlgmr.msrb.gmra.mxu3 %vm289_vm15, %v1543_v12 }
0x11fa   :  { %2698 = vmatpush.msk.msrb.mxu3 %vm293_vm6, %v3049_v34 }
0x11fc   :  { %2699 = vmatpush.msk.msrb.mxu3 %vm3058_vm4, %v2835_v29 }
0x1201   :  { %2688 = vmatmul.msk.f32.vlgmr.msra.gmra.mxu3 %vm208_vm2, %v1659_v33 }
0x1202   :  { %1895 = vmatpush.msra.mxu3 %v3235_v25 }
0x127c   :  { %v1564_v23 = vpop.f32.mrf.mxu3 }
0x127d   :  { %v1567_v19 = vsel %vm3142_vm8, %v1564_v23, %v1543_v12 }
0x127e   :  { %2682 = vmatmul.msk.f32.vlgmr.msra.gmra.mxu2 %vm289_vm15, %v1567_v19 }
0x127f   :  { %2701 = vmatpush.msk.msra.mxu2 %vm293_vm6, %v3092_v44 }
0x1281   :  { %2702 = vmatpush.msk.msra.mxu2 %vm3097_vm13, %v2835_v29 }
0x1284   :  { %v1687_v43 = vpop.f32.mrf.mxu3 }
0x1286   :  { %2691 = vmatmul.msk.f32.vlgmr.msrb.gmra.mxu2 %vm208_vm2, %v1691_v50 }
0x1287   :  { %1918 = vmatpush.msrb.mxu2 %v3199_v54 }
0x1301   :  { %v1588_v26 = vpop.f32.mrf.mxu2 }
0x1302   :  { %v1591_v25 = vsel %vm3156_vm9, %v1588_v26, %v1567_v19 }
0x1303   :  { %v1618_v10 = vadd.f32 %v1617_v28, %v1591_v25 }
0x1305   :  { %v1620_v30 = vmul.f32 0.35355338, %v1618_v10 }
0x1307   :  { %v1621_v33 = vsel %vm208_vm2, %v1620_v30, -inf }
0x1308   :  { %1622 = vmax.xlane.f32.xlu0 %v1621_v33 }
0x1309   :  { %v1711_v48 = vpop.f32.mrf.mxu2 }
0x130a   :  { %v1714_v49 = vsel %vm143_vm14, %v1711_v48, %v1687_v43 }
0x130b   :  { %2694 = vmatmul.msk.f32.vlgmr.msra.gmra.mxu0 %vm289_vm15, %v1714_v49 }
0x1313   :  { %2705 = vmatmul.msk.f32.vlgmr.msrb.gmra.mxu0 %vm208_vm2, %v1812_v41 }
0x131c   :  { %1927 = vrot.lane.b32.xlu0 %v3361_v32, %s2837_s19 }
0x1324   :  { %1925 = vrot.lane.b32.xlu0 %v3357_v22, %s2837_s19 }
0x137b   :  { %v1623_v54 = vpop.xlane.xlu0 %1622 }
0x137c   :  { %v1624_v17 = vsub.f32 %v1620_v30, %v1623_v54 }
0x137e   :  { %v1625_v50 = vmul.f32 1.442695, %v1624_v17 }
0x1380   :  { %2803 = vpow2.f32 %v1625_v50 }
0x1386   :  { %v2804_v51 = vpop.eup %2803 }
0x1387   :  { %v1627_v53 = vsel %vm208_vm2, %v2804_v51, 0.0 }
0x1388   :  { %1628 = vadd.xlane.f32.xlu1 %v1627_v53  ;;  %v1735_v1 = vpop.f32.mrf.mxu0 }
0x1389   :  { %v1738_v12 = vsel %vm3115_vm1, %v1735_v1, %v1714_v49 }
0x138e   :  { %v1928_v55 = vpop.permute.xlu0 %1927 }
0x138f   :  { %2709 = vmatpush.xpose.msk.msra.mxu0 %vm208_vm2, %v1928_v55 }
0x1390   :  { %v1836_v10 = vpop.f32.mrf.mxu0 }
0x1396   :  { %v1926_v57 = vpop.permute.xlu0 %1925 }
0x1397   :  { %2710 = vmatpush.xpose.msk.msra.mxu0 %vm208_vm2, %v1926_v57 }
0x139b   :  { %2721 = vmatpush.msk.msrb.mxu0 %vm293_vm6, %v3049_v34 }
0x139d   :  { %2722 = vmatpush.msk.msrb.mxu0 %vm3058_vm4, %v2835_v29 }
0x13a1   :  { %1851 = vrot.lane.b32.xlu1 %v3373_v31, %s2836_s3 }
0x13a9   :  { %1923 = vrot.lane.b32.xlu1 %v3377_v36, %s2841_s2 }
0x13b1   :  { %2078 = vrot.lane.b32.xlu1 %v3373_v31, %s2838_s20 }
0x13b9   :  { %2168 = vrot.lane.b32.xlu1 %v3357_v22, %s2839_s21 }
0x13c1   :  { %2166 = vrot.lane.b32.xlu1 %v3377_v36, %s2840_s22 }
0x13fb   :  { %v1629_v18 = vpop.xlane.xlu1 %1628 }
0x13fc   :  { %2805 = vrcp.f32 %v1629_v18 }
0x1402   :  { %v2806_v60 = vpop.eup %2805 }
0x1403   :  { %v1631_v63 = vmul.f32 %v2806_v60, %v2804_v51 }
0x1405   :  { %2685 = vmatmul.msk.f32.vlgmr.msra.gmra.mxu1 %vm208_vm2, %v1631_v63 }
0x140d   :  { %2697 = vmatmul.msk.f32.vlgmr.msrb.gmra.mxu1 %vm289_vm15, %v1738_v12 }
0x1413   :  { %v1852_v23 = vpop.permute.xlu1 %1851 }
0x1414   :  { %1872 = vmatpush.msra.mxu1 %v1852_v23 }
0x1416   :  { %2712 = vmatpush.xpose.msk.msrb.mxu1 %vm208_vm2, %v1928_v55 }
0x141a   :  { %2713 = vmatpush.xpose.msk.msrb.mxu1 %vm208_vm2, %v1926_v57 }
0x141b   :  { %v1924_v22 = vpop.permute.xlu1 %1923 }
0x141c   :  { %2711 = vmatmul.msk.f32.vlgmr.msra.gmra.mxu0 %vm208_vm2, %v1924_v22 }
0x141d   :  { %2160 = vmatpush.msra.mxu0 %v3295_v15 }
0x1482   :  { %v1655_v36 = vpop.f32.mrf.mxu1 }
0x148a   :  { %v1759_v19 = vpop.f32.mrf.mxu1 }
0x148b   :  { %v1762_v26 = vsel %vm3128_vm3, %v1759_v19, %v1738_v12 }
0x148c   :  { %2700 = vmatmul.msk.f32.vlgmr.msrb.gmra.mxu3 %vm289_vm15, %v1762_v26 }
0x148d   :  { %2715 = vmatpush.msk.msrb.mxu3 %vm293_vm6, %v3034_v27 }
0x148f   :  { %2716 = vmatpush.msk.msrb.mxu3 %vm88_vm7, %v2835_v29 }
0x1499   :  { %v1952_v1 = vpop.f32.mrf.mxu0 }
0x150f   :  { %v1783_v28 = vpop.f32.mrf.mxu3 }
0x1510   :  { %v1786_v25 = vsel %vm3142_vm8, %v1783_v28, %v1762_v26 }
0x1511   :  { %2703 = vmatmul.msk.f32.vlgmr.msra.gmra.mxu2 %vm289_vm15, %v1786_v25 }
0x1512   :  { %2718 = vmatpush.msk.msra.mxu2 %vm293_vm6, %v3054_v35 }
0x1514   :  { %2719 = vmatpush.msk.msra.mxu2 %vm3066_vm5, %v2835_v29 }
0x1519   :  { %2708 = vmatmul.msk.f32.vlgmr.msrb.gmra.mxu2 %vm208_vm2, %v1655_v36 }
0x1594   :  { %v1807_v15 = vpop.f32.mrf.mxu2 }
0x1595   :  { %v1810_v30 = vsel %vm3156_vm9, %v1807_v15, %v1786_v25 }
0x1596   :  { %v1837_v33 = vadd.f32 %v1836_v10, %v1810_v30 }
0x1598   :  { %v1839_v43 = vmul.f32 0.35355338, %v1837_v33 }
0x159a   :  { %v1840_v48 = vsel %vm208_vm2, %v1839_v43, -inf }
0x159b   :  { %1841 = vmax.xlane.f32.xlu2 %v1840_v48 }
0x159c   :  { %v1920_v46 = vpop.f32.mrf.mxu2 }
0x15b3   :  { %2076 = vrot.lane.b32.xlu2 %v3520_v45, %s2841_s2 }
0x15bb   :  { %2116 = vrot.lane.b32.xlu2 %v3373_v31, %s2842_s25 }
0x15c3   :  { %2321 = vrot.lane.b32.xlu2 %v3373_v31, %s2843_s26 }
0x15cb   :  { %2319 = vrot.lane.b32.xlu2 %v3520_v45, %s2840_s22 }
0x160e   :  { %v1842_v49 = vpop.xlane.xlu2 %1841 }
0x160f   :  { %v1843_v41 = vsub.f32 %v1839_v43, %v1842_v49 }
0x1611   :  { %v1844_v54 = vmul.f32 1.442695, %v1843_v41 }
0x1613   :  { %2807 = vpow2.f32 %v1844_v54 }
0x1616   :  { %v2077_v17 = vpop.permute.xlu2 %2076 }
0x1619   :  { %v2808_v50 = vpop.eup %2807 }
0x161a   :  { %v1846_v51 = vsel %vm208_vm2, %v2808_v50, 0.0 }
0x161b   :  { %1847 = vadd.xlane.f32.xlu0 %v1846_v51 }
0x161e   :  { %v2117_v53 = vpop.permute.xlu2 %2116 }
0x161f   :  { %2137 = vmatpush.msrb.mxu2 %v2117_v53 }
0x1626   :  { %v2322_v43 = vpop.permute.xlu2 %2321 }
0x162f   :  { %1955 = vrot.lane.b32.xlu0 %v3504_v13, %s2841_s2 }
0x1637   :  { %2170 = vrot.lane.b32.xlu0 %v3361_v32, %s2839_s21  ;;  %v2079_v32 = vpop.permute.xlu1 %2078 }
0x163f   :  { %2198 = vrot.lane.b32.xlu0 %v3504_v13, %s2840_s22  ;;  %v2169_v13 = vpop.permute.xlu1 %2168 }
0x1647   :  { %v2167_v24 = vpop.permute.xlu1 %2166 }
0x168e   :  { %v1848_v45 = vpop.xlane.xlu0 %1847 }
0x168f   :  { %2809 = vrcp.f32 %v1848_v45 }
0x1695   :  { %v2810_v55 = vpop.eup %2809 }
0x1696   :  { %v1850_v57 = vmul.f32 %v2810_v55, %v2808_v50 }
0x1698   :  { %2706 = vmatmul.msk.f32.vlgmr.msra.gmra.mxu1 %vm208_vm2, %v1850_v57 }
0x1699   :  { %2724 = vmatpush.msk.msra.mxu1 %vm293_vm6, %v3092_v44 }
0x169b   :  { %2725 = vmatpush.msk.msra.mxu1 %vm3097_vm13, %v2835_v29 }
0x16a1   :  { %v1956_v18 = vpop.permute.xlu0 %1955 }
0x16a2   :  { %2714 = vmatmul.msk.f32.vlgmr.msrb.gmra.mxu1 %vm208_vm2, %v1956_v18 }
0x16a9   :  { %v2171_v60 = vpop.permute.xlu0 %2170 }
0x16aa   :  { %2731 = vmatpush.xpose.msk.msrb.mxu1 %vm208_vm2, %v2171_v60 }
0x16ae   :  { %2732 = vmatpush.xpose.msk.msrb.mxu1 %vm208_vm2, %v2169_v13 }
0x16b1   :  { %v2199_v22 = vpop.permute.xlu0 %2198 }
0x1715   :  { %v1874_v63 = vpop.f32.mrf.mxu1 }
0x1716   :  { %2707 = vmatmul.msk.f32.vlgmr.msra.gmra.mxu3 %vm208_vm2, %v1874_v63 }
0x1717   :  { %2727 = vmatpush.xpose.msk.msra.mxu3 %vm208_vm2, %v2079_v32 }
0x171f   :  { %v1976_v12 = vpop.f32.mrf.mxu1 }
0x1720   :  { %v1979_v23 = vsel %vm143_vm14, %v1976_v12, %v1952_v1 }
0x1721   :  { %2717 = vmatmul.msk.f32.vlgmr.msrb.gmra.mxu3 %vm289_vm15, %v1979_v23 }
0x1722   :  { %2734 = vmatpush.xpose.msk.msrb.mxu3 %vm208_vm2, %v2171_v60 }
0x1726   :  { %2735 = vmatpush.xpose.msk.msrb.mxu3 %vm208_vm2, %v2169_v13 }
0x1729   :  { %2728 = vmatmul.msk.f32.vlgmr.msra.gmra.mxu3 %vm208_vm2, %v2077_v17 }
0x172a   :  { %2746 = vmatpush.msk.msra.mxu3 %vm293_vm6, %v3092_v44 }
0x172c   :  { %2747 = vmatpush.msk.msra.mxu3 %vm3097_vm13, %v2835_v29 }
0x1731   :  { %2736 = vmatmul.msk.f32.vlgmr.msrb.gmra.mxu3 %vm208_vm2, %v2199_v22  ;;  %v2827_v22 = vld [vmem:[%s3779_s0] sm:$0xff] }
0x1732   :  { %2469 = vmatpush.msrb.mxu3 %v3385_v39 }
0x1734   :  { %2470 = vmatpush.msrb.mxu3 %v3391_v40 }
0x1736   :  { %2471 = vmatpush.msrb.mxu3 %v3397_v11 }
0x1738   :  { %2472 = vmatpush.msrb.mxu3 %v3402_v42 }
0x1799   :  { %v3664_v36 = vpop.f32.mrf.mxu3 }
0x17a4   :  { %v2000_v19 = vpop.f32.mrf.mxu3 }
0x17a5   :  { %v2003_v44 = vsel %vm3115_vm1, %v2000_v19, %v1979_v23 }
0x17a6   :  { %2720 = vmatmul.msk.f32.vlgmr.msra.gmra.mxu2 %vm289_vm15, %v2003_v44 }
0x17a7   :  { %2737 = vmatpush.msk.msra.mxu2 %vm293_vm6, %v3034_v27 }
0x17a9   :  { %2738 = vmatpush.msk.msra.mxu2 %vm88_vm7, %v2835_v29 }
0x17ac   :  { %v2101_v38 = vpop.f32.mrf.mxu3 }
0x17b4   :  { %v2219_v49 = vpop.f32.mrf.mxu3 }
0x1829   :  { %v2024_v39 = vpop.f32.mrf.mxu2 }
0x182a   :  { %v2027_v40 = vsel %vm3128_vm3, %v2024_v39, %v2003_v44 }
0x182b   :  { %2723 = vmatmul.msk.f32.vlgmr.msrb.gmra.mxu0 %vm289_vm15, %v2027_v40 }
0x182c   :  { %2740 = vmatpush.msk.msrb.mxu0 %vm293_vm6, %v3054_v35 }
0x182e   :  { %2741 = vmatpush.msk.msrb.mxu0 %vm3066_vm5, %v2835_v29 }
0x18a8   :  { %v2048_v11 = vpop.f32.mrf.mxu0 }
0x18a9   :  { %v2051_v27 = vsel %vm3142_vm8, %v2048_v11, %v2027_v40 }
0x18aa   :  { %2726 = vmatmul.msk.f32.vlgmr.msra.gmra.mxu1 %vm289_vm15, %v2051_v27 }
0x18ab   :  { %2743 = vmatpush.msk.msra.mxu1 %vm293_vm6, %v3049_v34 }
0x18ad   :  { %2744 = vmatpush.msk.msra.mxu1 %vm3058_vm4, %v2835_v29 }
0x18b2   :  { %2733 = vmatmul.msk.f32.vlgmr.msrb.gmra.mxu1 %vm208_vm2, %v2167_v24 }
0x18b3   :  { %2403 = vmatpush.msrb.mxu1 %v3334_v58 }
0x1927   :  { %v2072_v35 = vpop.f32.mrf.mxu1 }
0x1928   :  { %v2075_v42 = vsel %vm3156_vm9, %v2072_v35, %v2051_v27 }
0x1929   :  { %v2102_v26 = vadd.f32 %v2101_v38, %v2075_v42 }
0x192b   :  { %v2104_v28 = vmul.f32 0.35355338, %v2102_v26 }
0x192d   :  { %v2105_v25 = vsel %vm208_vm2, %v2104_v28, -inf }
0x192e   :  { %2106 = vmax.xlane.f32.xlu0 %v2105_v25 }
0x192f   :  { %v2195_v48 = vpop.f32.mrf.mxu1 }
0x1930   :  { %v2222_v41 = vsel %vm143_vm14, %v2219_v49, %v2195_v48 }
0x19a1   :  { %v2107_v34 = vpop.xlane.xlu0 %2106 }
0x19a2   :  { %v2108_v15 = vsub.f32 %v2104_v28, %v2107_v34 }
0x19a4   :  { %v2109_v10 = vmul.f32 1.442695, %v2108_v15 }
0x19a6   :  { %2811 = vpow2.f32 %v2109_v10 }
0x19ac   :  { %v2812_v29 = vpop.eup %2811 }
0x19ad   :  { %v2111_v37 = vsel %vm208_vm2, %v2812_v29, 0.0 }
0x19ae   :  { %2112 = vadd.xlane.f32.xlu1 %v2111_v37 }
0x19c7   :  { %2359 = vrot.lane.b32.xlu1 %v3373_v31, %s2844_s18  ;;  %v2320_v31 = vpop.permute.xlu2 %2319 }
0x1a21   :  { %v2113_v58 = vpop.xlane.xlu1 %2112 }
0x1a22   :  { %2813 = vrcp.f32 %v2113_v58 }
0x1a28   :  { %v2814_v30 = vpop.eup %2813 }
0x1a29   :  { %v2115_v33 = vmul.f32 %v2814_v30, %v2812_v29 }
0x1a2b   :  { %2729 = vmatmul.msk.f32.vlgmr.msrb.gmra.mxu2 %vm208_vm2, %v2115_v33 }
0x1a2c   :  { %2749 = vmatpush.xpose.msk.msrb.mxu2 %vm208_vm2, %v2322_v43 }
0x1a33   :  { %2739 = vmatmul.msk.f32.vlgmr.msra.gmra.mxu2 %vm289_vm15, %v2222_v41 }
0x1a34   :  { %2497 = vmatpush.msra.mxu2 %v3448_v2 }
0x1a36   :  { %2498 = vmatpush.msra.mxu2 %v3454_v16 }
0x1a38   :  { %2499 = vmatpush.msra.mxu2 %v3460_v3  ;;  %v1921_v3 = vadd.f32 %v1920_v46, %v3664_v36 }
0x1a39   :  { %v2360_v54 = vpop.permute.xlu1 %2359 }
0x1a3a   :  { %2500 = vmatpush.msra.mxu2 %v3466_v6 }
0x1a3b   :  { %2750 = vmatmul.msk.f32.vlgmr.msrb.gmra.mxu2 %vm208_vm2, %v2320_v31 }
0x1a3c   :  { %2501 = vmatpush.msra.mxu2 %v3472_v7 }
0x1a3e   :  { %2502 = vmatpush.msra.mxu2 %v3477_v9 }
0x1a40   :  { %2503 = vmatpush.msra.mxu2 %v3484_v20 }
0x1a42   :  { %2504 = vmatpush.msra.mxu2 %v3489_v14 }
0x1aae   :  { %v2139_v47 = vpop.f32.mrf.mxu2 }
0x1aaf   :  { %2730 = vmatmul.msk.f32.vlgmr.msra.gmra.mxu0 %vm208_vm2, %v2139_v47 }
0x1ab0   :  { %2380 = vmatpush.msra.mxu0 %v2360_v54 }
0x1ab6   :  { %v2243_v2 = vpop.f32.mrf.mxu2 }
0x1ab7   :  { %v2246_v16 = vsel %vm3115_vm1, %v2243_v2, %v2222_v41 }
0x1ab8   :  { %2742 = vmatmul.msk.f32.vlgmr.msrb.gmra.mxu0 %vm289_vm15, %v2246_v16 }
0x1abe   :  { %v2344_v50 = vpop.f32.mrf.mxu2 }
0x1b2c   :  { %v2162_v6 = vpop.f32.mrf.mxu0 }
0x1b2d   :  { %v2165_v7 = vadd.f32 %v2162_v6, %v1921_v3 }
0x1b35   :  { %v2267_v9 = vpop.f32.mrf.mxu0 }
0x1b36   :  { %v2270_v20 = vsel %vm3128_vm3, %v2267_v9, %v2246_v16 }
0x1b37   :  { %2745 = vmatmul.msk.f32.vlgmr.msra.gmra.mxu1 %vm289_vm15, %v2270_v20 }
0x1bb4   :  { %v2291_v14 = vpop.f32.mrf.mxu1 }
0x1bb5   :  { %v2294_v17 = vsel %vm3142_vm8, %v2291_v14, %v2270_v20 }
0x1bb6   :  { %2748 = vmatmul.msk.f32.vlgmr.msra.gmra.mxu3 %vm289_vm15, %v2294_v17 }
0x1c39   :  { %v2315_v52 = vpop.f32.mrf.mxu3 }
0x1c3a   :  { %v2318_v51 = vsel %vm3156_vm9, %v2315_v52, %v2294_v17 }
0x1c3b   :  { %v2345_v53 = vadd.f32 %v2344_v50, %v2318_v51 }
0x1c3d   :  { %v2347_v45 = vmul.f32 0.35355338, %v2345_v53 }
0x1c3f   :  { %v2348_v55 = vsel %vm208_vm2, %v2347_v45, -inf }
0x1c40   :  { %2349 = vmax.xlane.f32.xlu2 %v2348_v55 }
0x1cb3   :  { %v2350_v56 = vpop.xlane.xlu2 %2349 }
0x1cb4   :  { %v2351_v57 = vsub.f32 %v2347_v45, %v2350_v56 }
0x1cb6   :  { %v2352_v18 = vmul.f32 1.442695, %v2351_v57 }
0x1cb8   :  { %2815 = vpow2.f32 %v2352_v18 }
0x1cbe   :  { %v2816_v32 = vpop.eup %2815 }
0x1cbf   :  { %v2354_v61 = vsel %vm208_vm2, %v2816_v32, 0.0 }
0x1cc0   :  { %2355 = vadd.xlane.f32.xlu0 %v2354_v61 }
0x1d33   :  { %v2356_v60 = vpop.xlane.xlu0 %2355 }
0x1d34   :  { %2817 = vrcp.f32 %v2356_v60  ;;  %v2780_v60 = vld [vmem:[%s3790_s12] ss:$0 sm:$0xff] }
0x1d3a   :  { %v2818_v13 = vpop.eup %2817 }
0x1d3b   :  { %v2358_v63 = vmul.f32 %v2818_v13, %v2816_v32  ;;  %v2779_v13 = vld [vmem:[%s3791_s13] ss:$0 sm:$0xff] }
0x1d3d   :  { %2751 = vmatmul.msk.f32.vlgmr.msra.gmra.mxu0 %vm208_vm2, %v2358_v63 }
0x1dba   :  { %v2382_v8 = vpop.f32.mrf.mxu0 }
0x1dbb   :  { %2752 = vmatmul.msk.f32.vlgmr.msrb.gmra.mxu1 %vm208_vm2, %v2382_v8 }
0x1e38   :  { %v2405_v1 = vpop.f32.mrf.mxu1 }
0x1e39   :  { %v2408_v12 = vadd.f32 %v2405_v1, %v2165_v7  ;;  %v2778_v7 = vld [vmem:[%s3789_s9] ss:$0 sm:$0xff] }
0x1e3a   :  { %v1322_v17 = vadd.f32 %v2778_v7, %v3535_v59 }
0x1e3b   :  { %2410 = vrot.lane.b32.xlu0 %v2408_v12, %s3809_s7 }
0x1e3c   :  { %v1324_v52 = vadd.f32 %v1322_v17, %v3431_v0 }
0x1e3e   :  { %v1325_v50 = vsel %vm147_vm0, %v1324_v52, 0.0 }
0x1ead   :  { %v2411_v23 = vpop.permute.xlu0 %2410 }
0x1eae   :  { %v2413_v36 = vadd.f32 %v2827_v22, %v2411_v23 }
0x1eb0   :  { %2415 = vrot.lane.b32.xlu2 %v2413_v36, %s2832_s30 }
0x1eb8   :  { %2444 = vrot.lane.b32.xlu2 %v3422_v5, %s3809_s7 }
0x1ec0   :  { %2448 = vrot.lane.b32.xlu2 %v3427_v62, %s3809_s7 }
0x1f0a   :  { %v2416_v19 = vpop.permute.xlu2 %2415 }
0x1f0b   :  { %v2418_v44 = vsel %vm147_vm0, %v2416_v19, 0.0 }
0x1f0c   :  { %2419 = vadd.xlane.f32.xlu1 %v2418_v44 }
0x1f12   :  { %v2445_v28 = vpop.permute.xlu2 %2444 }
0x1f1a   :  { %v2449_v37 = vpop.permute.xlu2 %2448 }
0x1f7f   :  { %v2420_v46 = vpop.xlane.xlu1 %2419 }
0x1f80   :  { %v2421_v39 = vmul.f32 %v2420_v46, %v3365_v4 }
0x1f82   :  { %v2422_v40 = vsub.f32 %v2413_v36, %v2421_v39 }
0x1f84   :  { %v2423_v11 = vmul.f32 %v2422_v40, %v2422_v40 }
0x1f86   :  { %2425 = vrot.lane.b32.xlu0 %v2423_v11, %s2832_s30 }
0x1ff8   :  { %v2426_v27 = vpop.permute.xlu0 %2425 }
0x1ff9   :  { %v2428_v24 = vsel %vm147_vm0, %v2426_v27, 0.0 }
0x1ffa   :  { %2429 = vadd.xlane.f32.xlu0 %v2428_v24 }
0x206d   :  { %v2430_v35 = vpop.xlane.xlu0 %2429 }
0x206e   :  { %v2431_v5 = vmul.f32 %v2430_v35, %v3365_v4 }
0x2070   :  { %v2432_v38 = vadd.f32 1e-05, %v2431_v5 }
0x2072   :  { %2819 = vrsqrt.f32 %v2432_v38  ;;  %vm2439_vm6 = vweird.f32 %v2432_v38 }
0x2078   :  { %v2820_v62 = vpop.eup %2819 }
0x2079   :  { %v2434_v42 = vmul.f32 %v2820_v62, %v2432_v38  ;;  %vm2440_vm2 = vweird.f32 %v2820_v62 }
0x207a   :  { %vm2441_vm7 = vmor %vm2439_vm6, %vm2440_vm2 }
0x207b   :  { %v2435_v26 = vmul.f32 %v2820_v62, %v2434_v42 }
0x207d   :  { %v2436_v25 = vmul.f32 0.5, %v2435_v26 }
0x207f   :  { %v2437_v34 = vsub.f32 1.5, %v2436_v25 }
0x2081   :  { %v2438_v15 = vmul.f32 %v2820_v62, %v2437_v34 }
0x2083   :  { %v2442_v10 = vsel %vm2441_vm7, %v2820_v62, %v2438_v15 }
0x2084   :  { %v2443_v29 = vmul.f32 %v2442_v10, %v2422_v40 }
0x2086   :  { %v2447_v58 = vmul.f32 %v2445_v28, %v2443_v29 }
0x2088   :  { %v2451_v30 = vadd.f32 %v2449_v37, %v2447_v58 }
0x208a   :  { %2453 = vrot.lane.b32.xlu2 %v2451_v30, %s2832_s30 }
0x20e4   :  { %v2454_v33 = vpop.permute.xlu2 %2453 }
0x20e5   :  { %2753 = vmatmul.msk.f32.vlgmr.msrb.gmra.mxu3 %vm147_vm0, %v2454_v33 }
0x2168   :  { %v2474_v43 = vpop.f32.mrf.mxu3 }
0x2169   :  { %v2475_v48 = vadd.f32 %v3501_v21, %v2474_v43 }
0x216b   :  { %v2478_v49 = vmul.f32 0.044715, %v2475_v48  ;;  %v2477_v16 = vmul.f32 0.5, %v2475_v48 }
0x216d   :  { %v2479_v41 = vmul.f32 %v2478_v49, %v2475_v48 }
0x216f   :  { %v2480_v31 = vmul.f32 %v2479_v41, %v2475_v48 }
0x2171   :  { %v2481_v47 = vadd.f32 %v2480_v31, %v2475_v48 }
0x2173   :  { %v2482_v54 = vmul.f32 0.7978846, %v2481_v47 }
0x2175   :  { %2821 = vtanh.f32 %v2482_v54 }
0x217b   :  { %v2822_v2 = vpop.eup %2821 }
0x217c   :  { %v2484_v3 = vadd.f32 1.0, %v2822_v2 }
0x217e   :  { %v2485_v6 = vmul.f32 %v2484_v3, %v2477_v16 }
0x2180   :  { %2754 = vmatmul.msk.f32.vlgmr.msra.gmra.mxu2 %vm1300_vm11, %v2485_v6 }
0x2203   :  { %v2506_v9 = vpop.f32.mrf.mxu2 }
0x2204   :  { %v2507_v20 = vadd.f32 %v2778_v7, %v2506_v9 }
0x2206   :  { %2510 = vrot.lane.b32.xlu1 %v2507_v20, %s3809_s7 }
0x2278   :  { %v2511_v21 = vpop.permute.xlu1 %2510 }
0x2279   :  { %v2513_v14 = vadd.f32 %v2511_v21, %v2451_v30 }
0x227b   :  { %2515 = vrot.lane.b32.xlu2 %v2513_v14, %s2832_s30 }
0x22a4   :  { %1326 = vadd.xlane.f32.xlu2 %v1325_v50 }
0x22bc   :  { %2544 = vrot.lane.b32.xlu2 %v2780_v60, %s3809_s7 }
0x22d5   :  { %v2516_v51 = vpop.permute.xlu2 %2515 }
0x22d6   :  { %v2518_v53 = vsel %vm147_vm0, %v2516_v51, 0.0 }
0x22d7   :  { %2519 = vadd.xlane.f32.xlu0 %v2518_v53 }
0x2317   :  { %v1327_v45 = vpop.xlane.xlu2 %1326 }
0x2318   :  { %v1328_v55 = vmul.f32 %v1327_v45, %v3365_v4 }
0x231a   :  { %v1329_v56 = vsub.f32 %v1324_v52, %v1328_v55 }
0x231c   :  { %v1330_v57 = vmul.f32 %v1329_v56, %v1329_v56 }
0x231e   :  { %v1331_v18 = vsel %vm147_vm0, %v1330_v57, 0.0 }
0x231f   :  { %1332 = vadd.xlane.f32.xlu1 %v1331_v18  ;;  %v2545_v10 = vpop.permute.xlu2 %2544 }
0x2338   :  { %2548 = vrot.lane.b32.xlu1 %v2779_v13, %s3809_s7 }
0x234a   :  { %v2520_v32 = vpop.xlane.xlu0 %2519 }
0x234b   :  { %v2521_v59 = vmul.f32 %v2520_v32, %v3365_v4 }
0x234d   :  { %v2522_v61 = vsub.f32 %v2513_v14, %v2521_v59 }
0x234f   :  { %v2523_v0 = vmul.f32 %v2522_v61, %v2522_v61 }
0x2351   :  { %2525 = vrot.lane.b32.xlu0 %v2523_v0, %s2832_s30 }
0x2392   :  { %v1333_v63 = vpop.xlane.xlu1 %1332 }
0x2393   :  { %v1334_v8 = vmul.f32 %v1333_v63, %v3365_v4 }
0x2395   :  { %v1335_v1 = vadd.f32 1e-05, %v1334_v8 }
0x2397   :  { %2823 = vrsqrt.f32 %v1335_v1  ;;  %vm1342_vm5 = vweird.f32 %v1335_v1 }
0x239d   :  { %v2824_v12 = vpop.eup %2823 }
0x239e   :  { %v1337_v23 = vmul.f32 %v2824_v12, %v1335_v1  ;;  %vm1343_vm4 = vweird.f32 %v2824_v12 }
0x239f   :  { %vm1344_vm13 = vmor %vm1342_vm5, %vm1343_vm4 }
0x23a0   :  { %v1338_v22 = vmul.f32 %v2824_v12, %v1337_v23 }
0x23a2   :  { %v1339_v36 = vmul.f32 0.5, %v1338_v22 }
0x23a4   :  { %v1340_v19 = vsub.f32 1.5, %v1339_v36 }
0x23a6   :  { %v1341_v44 = vmul.f32 %v2824_v12, %v1340_v19 }
0x23a8   :  { %v1345_v46 = vsel %vm1344_vm13, %v2824_v12, %v1341_v44 }
0x23a9   :  { %v1346_v39 = vmul.f32 %v1345_v46, %v1329_v56 }
0x23aa   :  { %v2549_v37 = vpop.permute.xlu1 %2548 }
0x23ab   :  { %v1350_v40 = vmul.f32 %v2780_v60, %v1346_v39 }
0x23ad   :  { %v1354_v11 = vadd.f32 %v2779_v13, %v1350_v40 }
0x23af   :  { %1355 = vst.msk [vmem:[%s3792_s14] sm:$0xff] %vm147_vm0, %v1354_v11 }
0x23c3   :  { %v2526_v27 = vpop.permute.xlu0 %2525 }
0x23c4   :  { %v2528_v24 = vsel %vm147_vm0, %v2526_v27, 0.0  ;;  %vm2552_vm0 = vcmask 523520  }
0x23c5   :  { %2529 = vadd.xlane.f32.xlu0 %v2528_v24 }
0x2438   :  { %v2530_v35 = vpop.xlane.xlu0 %2529 }
0x2439   :  { %v2531_v5 = vmul.f32 %v2530_v35, %v3365_v4 }
0x243b   :  { %v2532_v38 = vadd.f32 1e-05, %v2531_v5 }
0x243d   :  { %2825 = vrsqrt.f32 %v2532_v38  ;;  %vm2539_vm15 = vweird.f32 %v2532_v38 }
0x2443   :  { %v2826_v62 = vpop.eup %2825 }
0x2444   :  { %v2534_v42 = vmul.f32 %v2826_v62, %v2532_v38  ;;  %vm2540_vm14 = vweird.f32 %v2826_v62 }
0x2445   :  { %vm2541_vm1 = vmor %vm2539_vm15, %vm2540_vm14 }
0x2446   :  { %v2535_v26 = vmul.f32 %v2826_v62, %v2534_v42 }
0x2448   :  { %v2536_v28 = vmul.f32 0.5, %v2535_v26 }
0x244a   :  { %v2537_v25 = vsub.f32 1.5, %v2536_v28 }
0x244c   :  { %v2538_v34 = vmul.f32 %v2826_v62, %v2537_v25 }
0x244e   :  { %v2542_v15 = vsel %vm2541_vm1, %v2826_v62, %v2538_v34 }
0x244f   :  { %v2543_v29 = vmul.f32 %v2542_v15, %v2522_v61 }
0x2451   :  { %v2547_v58 = vmul.f32 %v2545_v10, %v2543_v29 }
0x2453   :  { %v2551_v30 = vadd.f32 %v2549_v37, %v2547_v58 }
0x2455   :  { %2553 = vst.msk [vmem:[%s3792_s14] sm:$0xff] %vm2552_vm0, %v2551_v30 }

</bundles_post_ra>
